<compile_context>
chip_gen: v7x
topology: tpu7x:2x2x1
jax: 0.10.0
libtpu: 0.0.40
codegen_flags: <defaults>
</compile_context>

<pallas_src>
import functools

import jax
import jax.numpy as jnp
from jax.experimental import pallas as pl
from jax.experimental.pallas import tpu as pltpu


def crf_norm_kernel(scores_ref, start_ref, end_ref, expTt_ref, colmax_ref,
                    norm_ref, alpha_ref, *, t_tile, t_true):
    """Per grid step: advance the alpha recursion over one tile of timesteps.

    scores_ref : (t_tile, tB, Lp)  emissions for this (batch, time) tile
    start_ref  : (1, Lp)           start scores (padded labels = -1e30)
    end_ref    : (1, Lp)           end scores   (padded labels = -1e30)
    expTt_ref  : (Lp, Lp)          exp(T[k, j] - colmax[k]) transposed -> [j, k]
    colmax_ref : (1, Lp)           per-current-label max of T (added back after log)
    norm_ref   : (tB, 1)           output normalizers (written at last time block)
    alpha_ref  : (tB, Lp)          persistent VMEM scratch carrying alpha across
                                   time blocks of the same batch block
    """
    ti = pl.program_id(1)                      # time-block index (sequential)
    start = start_ref[...]                     # (1, Lp)
    expTt = expTt_ref[...]                     # (Lp, Lp)
    colmax = colmax_ref[...]                   # (1, Lp)

    # Short static inner loop -> fully unrolled at trace time (LLO visibility).
    for t in range(t_tile):
        t_glob = ti * t_tile + t
        emit = scores_ref[t]                   # (tB, Lp)

        @pl.when(t_glob == 0)
        def _():
            alpha_ref[...] = start + emit

        @pl.when(jnp.logical_and(t_glob > 0, t_glob < t_true))
        def _():
            alpha = alpha_ref[...]
            m = jnp.max(alpha, axis=1, keepdims=True)                  # (tB, 1)
            s = jnp.dot(jnp.exp(alpha - m), expTt,
                        preferred_element_type=jnp.float32)            # (tB, Lp)
            alpha_ref[...] = emit + m + colmax + jnp.log(jnp.maximum(s, 1e-30))

    @pl.when(ti == pl.num_programs(1) - 1)
    def _():
        a = alpha_ref[...] + end_ref[...]                              # (tB, Lp)
        m = jnp.max(a, axis=1, keepdims=True)
        norm_ref[...] = m + jnp.log(jnp.sum(jnp.exp(a - m), axis=1, keepdims=True))


def crf_loss(scores, targets, start, trans, end, *, t_tile=8, b_tile=8):
    """scores: (B, T, L) f32, targets: (B, T) int32. Returns the scalar CRF loss."""
    B, T, L = scores.shape
    scores = scores.astype(jnp.float32)
    start = start.astype(jnp.float32)
    trans = trans.astype(jnp.float32)
    end = end.astype(jnp.float32)

    NEG = jnp.float32(-1e30)
    Lp = pl.cdiv(L, 128) * 128                 # lane-dense label dim
    Bp = pl.cdiv(B, b_tile) * b_tile           # sublane-aligned batch
    Tp = pl.cdiv(T, t_tile) * t_tile           # time padded to the time tile
    nB = Bp // b_tile
    nT = Tp // t_tile

    # Padded, time-major emissions (single wrapper pass: pad + relayout fused).
    # Padded label columns get -1e30 so they never win the logsumexp; padded
    # batch rows / time steps are ignored (sliced off / masked in the kernel).
    scores_p = jnp.full((Tp, Bp, Lp), NEG, jnp.float32)
    scores_p = scores_p.at[:, :, :L].set(0.0)
    scores_p = scores_p.at[:T, :B, :L].set(jnp.transpose(scores, (1, 0, 2)))

    start_p = jnp.full((1, Lp), NEG, jnp.float32).at[0, :L].set(start)
    end_p = jnp.full((1, Lp), NEG, jnp.float32).at[0, :L].set(end)
    trans_p = jnp.full((Lp, Lp), NEG, jnp.float32).at[:L, :L].set(trans)

    # Exp-space transition matrix for the MXU, stabilized per current label:
    #   expTt[j, k] = exp(T[k, j] - colmax[k])
    colmax = jnp.max(trans_p, axis=1)                       # (Lp,)
    expTt = jnp.exp(trans_p - colmax[:, None]).T            # (Lp, Lp), rows = prev j
    colmax_row = colmax.reshape(1, Lp)

    kernel = functools.partial(crf_norm_kernel, t_tile=t_tile, t_true=T)

    normalizers = pl.pallas_call(
        kernel,
        out_shape=jax.ShapeDtypeStruct((Bp, 1), jnp.float32),
        grid_spec=pltpu.PrefetchScalarGridSpec(
            num_scalar_prefetch=0,
            grid=(nB, nT),
            in_specs=[
                pl.BlockSpec((t_tile, b_tile, Lp), lambda bi, ti: (ti, bi, 0)),
                pl.BlockSpec((1, Lp), lambda bi, ti: (0, 0)),
                pl.BlockSpec((1, Lp), lambda bi, ti: (0, 0)),
                pl.BlockSpec((Lp, Lp), lambda bi, ti: (0, 0)),
                pl.BlockSpec((1, Lp), lambda bi, ti: (0, 0)),
            ],
            out_specs=pl.BlockSpec((b_tile, 1), lambda bi, ti: (bi, 0)),
            scratch_shapes=[pltpu.VMEM((b_tile, Lp), jnp.float32)],
        ),
        compiler_params=pltpu.CompilerParams(
            dimension_semantics=("parallel", "arbitrary")),
    )(scores_p, start_p, end_p, expTt, colmax_row)[:B, 0]

    # Target-path score: O(B*T) scalar gather work -> done outside the kernel.
    emits = jnp.take_along_axis(scores, targets[:, :, None], axis=2)[..., 0].sum(axis=1)
    tr = start[targets[:, 0]] + end[targets[:, -1]]
    tr = tr + trans[targets[:, 1:], targets[:, :-1]].sum(axis=1)
    target_scores = emits + tr

    return jnp.mean(normalizers - target_scores)


def crf_loss_ref(scores, targets, start, trans, end):
    """Pure-JAX reference mirroring the PyTorch module exactly."""
    B, T, L = scores.shape
    prev = start[None, :] + scores[:, 0]
    for i in range(1, T):
        cur = prev[:, :, None] + scores[:, i][:, None, :] + trans.T[None]  # [b, j, k]
        prev = jax.scipy.special.logsumexp(cur, axis=1)
    prev = prev + end[None, :]
    normalizers = jax.scipy.special.logsumexp(prev, axis=1)

    emits = jnp.take_along_axis(scores, targets[:, :, None], axis=2)[..., 0].sum(axis=1)
    tr = start[targets[:, 0]] + end[targets[:, -1]]
    tr = tr + trans[targets[:, 1:], targets[:, :-1]].sum(axis=1)
    return jnp.mean(normalizers - (emits + tr))


if __name__ == "__main__":
    B, T, L = 10, 12, 8     # pads to Bp=16 (2 batch blocks), Tp=16 (2 time blocks), Lp=128
    init = 0.1

    key = jax.random.PRNGKey(0)
    k_sc, k_tg, k_st, k_tr, k_en = jax.random.split(key, 5)

    scores = jax.random.normal(k_sc, (B, T, L), dtype=jnp.float32)
    targets = jax.random.randint(k_tg, (B, T), 0, L, dtype=jnp.int32)

    # deterministic parameter init mirroring nn.Parameter(...).uniform_(-init, init)
    start = jax.random.uniform(k_st, (L,), minval=-init, maxval=init, dtype=jnp.float32)
    trans = jax.random.uniform(k_tr, (L, L), minval=-init, maxval=init, dtype=jnp.float32)
    end = jax.random.uniform(k_en, (L,), minval=-init, maxval=init, dtype=jnp.float32)

    loss = jax.block_until_ready(crf_loss(scores, targets, start, trans, end))
    loss_ref_v = jax.block_until_ready(crf_loss_ref(scores, targets, start, trans, end))

    assert jnp.allclose(loss, loss_ref_v, atol=1e-3, rtol=1e-3), (loss, loss_ref_v)
    print("KERNEL_OK")
</pallas_src>

<mosaic_0001>
module attributes {stable_mosaic.version = 11 : i64} {
  func.func @crf_norm_kernel(%arg0: i32, %arg1: i32, %arg2: memref<8x8x128xf32, #tpu.memory_space<vmem>>, %arg3: memref<1x128xf32, #tpu.memory_space<vmem>>, %arg4: memref<1x128xf32, #tpu.memory_space<vmem>>, %arg5: memref<128x128xf32, #tpu.memory_space<vmem>>, %arg6: memref<1x128xf32, #tpu.memory_space<vmem>>, %arg7: memref<8x1xf32, #tpu.memory_space<vmem>>, %arg8: memref<8x128xf32, #tpu.memory_space<vmem>>) attributes {dimension_semantics = [#tpu.dimension_semantics<parallel>, #tpu.dimension_semantics<arbitrary>], iteration_bounds = array<i64: 2, 2>, scalar_prefetch = 0 : i64, scratch_operands = 1 : i64, tpu.core_type = #tpu.core_type<tc>, window_params = [{transform_indices = @transform_0, window_bounds = array<i64: 8, 8, 128>}, {pipeline_mode = #tpu.pipeline_mode<synchronous>, transform_indices = @transform_1, window_bounds = array<i64: 1, 128>}, {pipeline_mode = #tpu.pipeline_mode<synchronous>, transform_indices = @transform_2, window_bounds = array<i64: 1, 128>}, {pipeline_mode = #tpu.pipeline_mode<synchronous>, transform_indices = @transform_3, window_bounds = array<i64: 128, 128>}, {pipeline_mode = #tpu.pipeline_mode<synchronous>, transform_indices = @transform_4, window_bounds = array<i64: 1, 128>}, {transform_indices = @transform_5, window_bounds = array<i64: 8, 1>}]} {
    %c0 = arith.constant 0 : index
    %c0_0 = arith.constant 0 : index
    %0 = vector.load %arg3[%c0, %c0_0] : memref<1x128xf32, #tpu.memory_space<vmem>>, vector<1x128xf32>
    %c0_1 = arith.constant 0 : index
    %c0_2 = arith.constant 0 : index
    %1 = vector.load %arg5[%c0_1, %c0_2] : memref<128x128xf32, #tpu.memory_space<vmem>>, vector<128x128xf32>
    %c0_3 = arith.constant 0 : index
    %c0_4 = arith.constant 0 : index
    %2 = vector.load %arg6[%c0_3, %c0_4] : memref<1x128xf32, #tpu.memory_space<vmem>>, vector<1x128xf32>
    %c8_i32 = arith.constant 8 : i32
    %3 = arith.muli %arg1, %c8_i32 : i32
    %c0_i32 = arith.constant 0 : i32
    %4 = arith.addi %3, %c0_i32 : i32
    %c0_5 = arith.constant 0 : index
    %c0_6 = arith.constant 0 : index
    %c0_7 = arith.constant 0 : index
    %5 = vector.load %arg2[%c0_5, %c0_6, %c0_7] : memref<8x8x128xf32, #tpu.memory_space<vmem>>, vector<1x8x128xf32>
    %6 = vector.shape_cast %5 : vector<1x8x128xf32> to vector<8x128xf32>
    %c0_i32_8 = arith.constant 0 : i32
    %7 = arith.cmpi eq, %4, %c0_i32_8 : i32
    %8 = arith.extui %7 : i1 to i32
    %c0_i32_9 = arith.constant 0 : i32
    %9 = arith.cmpi ne, %8, %c0_i32_9 : i32
    scf.if %9 {
      %102 = vector.broadcast %0 : vector<1x128xf32> to vector<8x128xf32>
      %103 = arith.addf %102, %6 : vector<8x128xf32>
      %c0_70 = arith.constant 0 : index
      %c0_71 = arith.constant 0 : index
      %104 = vector.load %arg8[%c0_70, %c0_71] : memref<8x128xf32, #tpu.memory_space<vmem>>, vector<8x128xf32>
      tpu.vector_store %arg8[%c0_70, %c0_71], %103 {strides = array<i32>} : memref<8x128xf32, #tpu.memory_space<vmem>>, vector<8x128xf32>,
    } else {
    }
    %c0_i32_10 = arith.constant 0 : i32
    %10 = arith.cmpi sgt, %4, %c0_i32_10 : i32
    %c12_i32 = arith.constant 12 : i32
    %11 = arith.cmpi slt, %4, %c12_i32 : i32
    %12 = arith.andi %10, %11 : i1
    %13 = arith.extui %12 : i1 to i32
    %c0_i32_11 = arith.constant 0 : i32
    %14 = arith.cmpi ne, %13, %c0_i32_11 : i32
    scf.if %14 {
      %c0_70 = arith.constant 0 : index
      %c0_71 = arith.constant 0 : index
      %102 = vector.load %arg8[%c0_70, %c0_71] : memref<8x128xf32, #tpu.memory_space<vmem>>, vector<8x128xf32>
      %cst = arith.constant dense<0xFF800000> : vector<8xf32>
      %103 = vector.multi_reduction <maximumf>, %102, %cst [1] : vector<8x128xf32> to vector<8xf32>
      %104 = vector.shape_cast %103 : vector<8xf32> to vector<8x1xf32>
      %105 = vector.broadcast %104 : vector<8x1xf32> to vector<8x128xf32>
      %106 = arith.subf %102, %105 : vector<8x128xf32>
      %107 = math.exp %106 : vector<8x128xf32>
      %cst_72 = arith.constant dense<0.000000e+00> : vector<8x128xf32>
      %108 = tpu.matmul %107, %1, %cst_72 {dimension_numbers = #tpu.dot_dimension_numbers<[1], [0], [0], [1], [0, 0, 1, 1], [], []>} : vector<8x128xf32>, vector<128x128xf32>, vector<8x128xf32> -> vector<8x128xf32>
      %109 = vector.broadcast %104 : vector<8x1xf32> to vector<8x128xf32>
      %110 = arith.addf %6, %109 : vector<8x128xf32>
      %111 = vector.broadcast %2 : vector<1x128xf32> to vector<8x128xf32>
      %112 = arith.addf %110, %111 : vector<8x128xf32>
      %cst_73 = arith.constant 1.000000e-30 : f32
      %113 = vector.broadcast %cst_73 : f32 to vector<8x128xf32>
      %114 = arith.maximumf %108, %113 : vector<8x128xf32>
      %115 = math.log %114 : vector<8x128xf32>
      %116 = arith.addf %112, %115 : vector<8x128xf32>
      %c0_74 = arith.constant 0 : index
      %c0_75 = arith.constant 0 : index
      %117 = vector.load %arg8[%c0_74, %c0_75] : memref<8x128xf32, #tpu.memory_space<vmem>>, vector<8x128xf32>
      tpu.vector_store %arg8[%c0_74, %c0_75], %116 {strides = array<i32>} : memref<8x128xf32, #tpu.memory_space<vmem>>, vector<8x128xf32>,
    } else {
    }
    %c8_i32_12 = arith.constant 8 : i32
    %15 = arith.muli %arg1, %c8_i32_12 : i32
    %c1_i32 = arith.constant 1 : i32
    %16 = arith.addi %15, %c1_i32 : i32
    %c1 = arith.constant 1 : index
    %c0_13 = arith.constant 0 : index
    %c0_14 = arith.constant 0 : index
    %17 = vector.load %arg2[%c1, %c0_13, %c0_14] : memref<8x8x128xf32, #tpu.memory_space<vmem>>, vector<1x8x128xf32>
    %18 = vector.shape_cast %17 : vector<1x8x128xf32> to vector<8x128xf32>
    %c0_i32_15 = arith.constant 0 : i32
    %19 = arith.cmpi eq, %16, %c0_i32_15 : i32
    %20 = arith.extui %19 : i1 to i32
    %c0_i32_16 = arith.constant 0 : i32
    %21 = arith.cmpi ne, %20, %c0_i32_16 : i32
    scf.if %21 {
      %102 = vector.broadcast %0 : vector<1x128xf32> to vector<8x128xf32>
      %103 = arith.addf %102, %18 : vector<8x128xf32>
      %c0_70 = arith.constant 0 : index
      %c0_71 = arith.constant 0 : index
      %104 = vector.load %arg8[%c0_70, %c0_71] : memref<8x128xf32, #tpu.memory_space<vmem>>, vector<8x128xf32>
      tpu.vector_store %arg8[%c0_70, %c0_71], %103 {strides = array<i32>} : memref<8x128xf32, #tpu.memory_space<vmem>>, vector<8x128xf32>,
    } else {
    }
    %c0_i32_17 = arith.constant 0 : i32
    %22 = arith.cmpi sgt, %16, %c0_i32_17 : i32
    %c12_i32_18 = arith.constant 12 : i32
    %23 = arith.cmpi slt, %16, %c12_i32_18 : i32
    %24 = arith.andi %22, %23 : i1
    %25 = arith.extui %24 : i1 to i32
    %c0_i32_19 = arith.constant 0 : i32
    %26 = arith.cmpi ne, %25, %c0_i32_19 : i32
    scf.if %26 {
      %c0_70 = arith.constant 0 : index
      %c0_71 = arith.constant 0 : index
      %102 = vector.load %arg8[%c0_70, %c0_71] : memref<8x128xf32, #tpu.memory_space<vmem>>, vector<8x128xf32>
      %cst = arith.constant dense<0xFF800000> : vector<8xf32>
      %103 = vector.multi_reduction <maximumf>, %102, %cst [1] : vector<8x128xf32> to vector<8xf32>
      %104 = vector.shape_cast %103 : vector<8xf32> to vector<8x1xf32>
      %105 = vector.broadcast %104 : vector<8x1xf32> to vector<8x128xf32>
      %106 = arith.subf %102, %105 : vector<8x128xf32>
      %107 = math.exp %106 : vector<8x128xf32>
      %cst_72 = arith.constant dense<0.000000e+00> : vector<8x128xf32>
      %108 = tpu.matmul %107, %1, %cst_72 {dimension_numbers = #tpu.dot_dimension_numbers<[1], [0], [0], [1], [0, 0, 1, 1], [], []>} : vector<8x128xf32>, vector<128x128xf32>, vector<8x128xf32> -> vector<8x128xf32>
      %109 = vector.broadcast %104 : vector<8x1xf32> to vector<8x128xf32>
      %110 = arith.addf %18, %109 : vector<8x128xf32>
      %111 = vector.broadcast %2 : vector<1x128xf32> to vector<8x128xf32>
      %112 = arith.addf %110, %111 : vector<8x128xf32>
      %cst_73 = arith.constant 1.000000e-30 : f32
      %113 = vector.broadcast %cst_73 : f32 to vector<8x128xf32>
      %114 = arith.maximumf %108, %113 : vector<8x128xf32>
      %115 = math.log %114 : vector<8x128xf32>
      %116 = arith.addf %112, %115 : vector<8x128xf32>
      %c0_74 = arith.constant 0 : index
      %c0_75 = arith.constant 0 : index
      %117 = vector.load %arg8[%c0_74, %c0_75] : memref<8x128xf32, #tpu.memory_space<vmem>>, vector<8x128xf32>
      tpu.vector_store %arg8[%c0_74, %c0_75], %116 {strides = array<i32>} : memref<8x128xf32, #tpu.memory_space<vmem>>, vector<8x128xf32>,
    } else {
    }
    %c8_i32_20 = arith.constant 8 : i32
    %27 = arith.muli %arg1, %c8_i32_20 : i32
    %c2_i32 = arith.constant 2 : i32
    %28 = arith.addi %27, %c2_i32 : i32
    %c2 = arith.constant 2 : index
    %c0_21 = arith.constant 0 : index
    %c0_22 = arith.constant 0 : index
    %29 = vector.load %arg2[%c2, %c0_21, %c0_22] : memref<8x8x128xf32, #tpu.memory_space<vmem>>, vector<1x8x128xf32>
    %30 = vector.shape_cast %29 : vector<1x8x128xf32> to vector<8x128xf32>
    %c0_i32_23 = arith.constant 0 : i32
    %31 = arith.cmpi eq, %28, %c0_i32_23 : i32
    %32 = arith.extui %31 : i1 to i32
    %c0_i32_24 = arith.constant 0 : i32
    %33 = arith.cmpi ne, %32, %c0_i32_24 : i32
    scf.if %33 {
      %102 = vector.broadcast %0 : vector<1x128xf32> to vector<8x128xf32>
      %103 = arith.addf %102, %30 : vector<8x128xf32>
      %c0_70 = arith.constant 0 : index
      %c0_71 = arith.constant 0 : index
      %104 = vector.load %arg8[%c0_70, %c0_71] : memref<8x128xf32, #tpu.memory_space<vmem>>, vector<8x128xf32>
      tpu.vector_store %arg8[%c0_70, %c0_71], %103 {strides = array<i32>} : memref<8x128xf32, #tpu.memory_space<vmem>>, vector<8x128xf32>,
    } else {
    }
    %c0_i32_25 = arith.constant 0 : i32
    %34 = arith.cmpi sgt, %28, %c0_i32_25 : i32
    %c12_i32_26 = arith.constant 12 : i32
    %35 = arith.cmpi slt, %28, %c12_i32_26 : i32
    %36 = arith.andi %34, %35 : i1
    %37 = arith.extui %36 : i1 to i32
    %c0_i32_27 = arith.constant 0 : i32
    %38 = arith.cmpi ne, %37, %c0_i32_27 : i32
    scf.if %38 {
      %c0_70 = arith.constant 0 : index
      %c0_71 = arith.constant 0 : index
      %102 = vector.load %arg8[%c0_70, %c0_71] : memref<8x128xf32, #tpu.memory_space<vmem>>, vector<8x128xf32>
      %cst = arith.constant dense<0xFF800000> : vector<8xf32>
      %103 = vector.multi_reduction <maximumf>, %102, %cst [1] : vector<8x128xf32> to vector<8xf32>
      %104 = vector.shape_cast %103 : vector<8xf32> to vector<8x1xf32>
      %105 = vector.broadcast %104 : vector<8x1xf32> to vector<8x128xf32>
      %106 = arith.subf %102, %105 : vector<8x128xf32>
      %107 = math.exp %106 : vector<8x128xf32>
      %cst_72 = arith.constant dense<0.000000e+00> : vector<8x128xf32>
      %108 = tpu.matmul %107, %1, %cst_72 {dimension_numbers = #tpu.dot_dimension_numbers<[1], [0], [0], [1], [0, 0, 1, 1], [], []>} : vector<8x128xf32>, vector<128x128xf32>, vector<8x128xf32> -> vector<8x128xf32>
      %109 = vector.broadcast %104 : vector<8x1xf32> to vector<8x128xf32>
      %110 = arith.addf %30, %109 : vector<8x128xf32>
      %111 = vector.broadcast %2 : vector<1x128xf32> to vector<8x128xf32>
      %112 = arith.addf %110, %111 : vector<8x128xf32>
      %cst_73 = arith.constant 1.000000e-30 : f32
      %113 = vector.broadcast %cst_73 : f32 to vector<8x128xf32>
      %114 = arith.maximumf %108, %113 : vector<8x128xf32>
      %115 = math.log %114 : vector<8x128xf32>
      %116 = arith.addf %112, %115 : vector<8x128xf32>
      %c0_74 = arith.constant 0 : index
      %c0_75 = arith.constant 0 : index
      %117 = vector.load %arg8[%c0_74, %c0_75] : memref<8x128xf32, #tpu.memory_space<vmem>>, vector<8x128xf32>
      tpu.vector_store %arg8[%c0_74, %c0_75], %116 {strides = array<i32>} : memref<8x128xf32, #tpu.memory_space<vmem>>, vector<8x128xf32>,
    } else {
    }
    %c8_i32_28 = arith.constant 8 : i32
    %39 = arith.muli %arg1, %c8_i32_28 : i32
    %c3_i32 = arith.constant 3 : i32
    %40 = arith.addi %39, %c3_i32 : i32
    %c3 = arith.constant 3 : index
    %c0_29 = arith.constant 0 : index
    %c0_30 = arith.constant 0 : index
    %41 = vector.load %arg2[%c3, %c0_29, %c0_30] : memref<8x8x128xf32, #tpu.memory_space<vmem>>, vector<1x8x128xf32>
    %42 = vector.shape_cast %41 : vector<1x8x128xf32> to vector<8x128xf32>
    %c0_i32_31 = arith.constant 0 : i32
    %43 = arith.cmpi eq, %40, %c0_i32_31 : i32
    %44 = arith.extui %43 : i1 to i32
    %c0_i32_32 = arith.constant 0 : i32
    %45 = arith.cmpi ne, %44, %c0_i32_32 : i32
    scf.if %45 {
      %102 = vector.broadcast %0 : vector<1x128xf32> to vector<8x128xf32>
      %103 = arith.addf %102, %42 : vector<8x128xf32>
      %c0_70 = arith.constant 0 : index
      %c0_71 = arith.constant 0 : index
      %104 = vector.load %arg8[%c0_70, %c0_71] : memref<8x128xf32, #tpu.memory_space<vmem>>, vector<8x128xf32>
      tpu.vector_store %arg8[%c0_70, %c0_71], %103 {strides = array<i32>} : memref<8x128xf32, #tpu.memory_space<vmem>>, vector<8x128xf32>,
    } else {
    }
    %c0_i32_33 = arith.constant 0 : i32
    %46 = arith.cmpi sgt, %40, %c0_i32_33 : i32
    %c12_i32_34 = arith.constant 12 : i32
    %47 = arith.cmpi slt, %40, %c12_i32_34 : i32
    %48 = arith.andi %46, %47 : i1
    %49 = arith.extui %48 : i1 to i32
    %c0_i32_35 = arith.constant 0 : i32
    %50 = arith.cmpi ne, %49, %c0_i32_35 : i32
    scf.if %50 {
      %c0_70 = arith.constant 0 : index
      %c0_71 = arith.constant 0 : index
      %102 = vector.load %arg8[%c0_70, %c0_71] : memref<8x128xf32, #tpu.memory_space<vmem>>, vector<8x128xf32>
      %cst = arith.constant dense<0xFF800000> : vector<8xf32>
      %103 = vector.multi_reduction <maximumf>, %102, %cst [1] : vector<8x128xf32> to vector<8xf32>
      %104 = vector.shape_cast %103 : vector<8xf32> to vector<8x1xf32>
      %105 = vector.broadcast %104 : vector<8x1xf32> to vector<8x128xf32>
      %106 = arith.subf %102, %105 : vector<8x128xf32>
      %107 = math.exp %106 : vector<8x128xf32>
      %cst_72 = arith.constant dense<0.000000e+00> : vector<8x128xf32>
      %108 = tpu.matmul %107, %1, %cst_72 {dimension_numbers = #tpu.dot_dimension_numbers<[1], [0], [0], [1], [0, 0, 1, 1], [], []>} : vector<8x128xf32>, vector<128x128xf32>, vector<8x128xf32> -> vector<8x128xf32>
      %109 = vector.broadcast %104 : vector<8x1xf32> to vector<8x128xf32>
      %110 = arith.addf %42, %109 : vector<8x128xf32>
      %111 = vector.broadcast %2 : vector<1x128xf32> to vector<8x128xf32>
      %112 = arith.addf %110, %111 : vector<8x128xf32>
      %cst_73 = arith.constant 1.000000e-30 : f32
      %113 = vector.broadcast %cst_73 : f32 to vector<8x128xf32>
      %114 = arith.maximumf %108, %113 : vector<8x128xf32>
      %115 = math.log %114 : vector<8x128xf32>
      %116 = arith.addf %112, %115 : vector<8x128xf32>
      %c0_74 = arith.constant 0 : index
      %c0_75 = arith.constant 0 : index
      %117 = vector.load %arg8[%c0_74, %c0_75] : memref<8x128xf32, #tpu.memory_space<vmem>>, vector<8x128xf32>
      tpu.vector_store %arg8[%c0_74, %c0_75], %116 {strides = array<i32>} : memref<8x128xf32, #tpu.memory_space<vmem>>, vector<8x128xf32>,
    } else {
    }
    %c8_i32_36 = arith.constant 8 : i32
    %51 = arith.muli %arg1, %c8_i32_36 : i32
    %c4_i32 = arith.constant 4 : i32
    %52 = arith.addi %51, %c4_i32 : i32
    %c4 = arith.constant 4 : index
    %c0_37 = arith.constant 0 : index
    %c0_38 = arith.constant 0 : index
    %53 = vector.load %arg2[%c4, %c0_37, %c0_38] : memref<8x8x128xf32, #tpu.memory_space<vmem>>, vector<1x8x128xf32>
    %54 = vector.shape_cast %53 : vector<1x8x128xf32> to vector<8x128xf32>
    %c0_i32_39 = arith.constant 0 : i32
    %55 = arith.cmpi eq, %52, %c0_i32_39 : i32
    %56 = arith.extui %55 : i1 to i32
    %c0_i32_40 = arith.constant 0 : i32
    %57 = arith.cmpi ne, %56, %c0_i32_40 : i32
    scf.if %57 {
      %102 = vector.broadcast %0 : vector<1x128xf32> to vector<8x128xf32>
      %103 = arith.addf %102, %54 : vector<8x128xf32>
      %c0_70 = arith.constant 0 : index
      %c0_71 = arith.constant 0 : index
      %104 = vector.load %arg8[%c0_70, %c0_71] : memref<8x128xf32, #tpu.memory_space<vmem>>, vector<8x128xf32>
      tpu.vector_store %arg8[%c0_70, %c0_71], %103 {strides = array<i32>} : memref<8x128xf32, #tpu.memory_space<vmem>>, vector<8x128xf32>,
    } else {
    }
    %c0_i32_41 = arith.constant 0 : i32
    %58 = arith.cmpi sgt, %52, %c0_i32_41 : i32
    %c12_i32_42 = arith.constant 12 : i32
    %59 = arith.cmpi slt, %52, %c12_i32_42 : i32
    %60 = arith.andi %58, %59 : i1
    %61 = arith.extui %60 : i1 to i32
    %c0_i32_43 = arith.constant 0 : i32
    %62 = arith.cmpi ne, %61, %c0_i32_43 : i32
    scf.if %62 {
      %c0_70 = arith.constant 0 : index
      %c0_71 = arith.constant 0 : index
      %102 = vector.load %arg8[%c0_70, %c0_71] : memref<8x128xf32, #tpu.memory_space<vmem>>, vector<8x128xf32>
      %cst = arith.constant dense<0xFF800000> : vector<8xf32>
      %103 = vector.multi_reduction <maximumf>, %102, %cst [1] : vector<8x128xf32> to vector<8xf32>
      %104 = vector.shape_cast %103 : vector<8xf32> to vector<8x1xf32>
      %105 = vector.broadcast %104 : vector<8x1xf32> to vector<8x128xf32>
      %106 = arith.subf %102, %105 : vector<8x128xf32>
      %107 = math.exp %106 : vector<8x128xf32>
      %cst_72 = arith.constant dense<0.000000e+00> : vector<8x128xf32>
      %108 = tpu.matmul %107, %1, %cst_72 {dimension_numbers = #tpu.dot_dimension_numbers<[1], [0], [0], [1], [0, 0, 1, 1], [], []>} : vector<8x128xf32>, vector<128x128xf32>, vector<8x128xf32> -> vector<8x128xf32>
      %109 = vector.broadcast %104 : vector<8x1xf32> to vector<8x128xf32>
      %110 = arith.addf %54, %109 : vector<8x128xf32>
      %111 = vector.broadcast %2 : vector<1x128xf32> to vector<8x128xf32>
      %112 = arith.addf %110, %111 : vector<8x128xf32>
      %cst_73 = arith.constant 1.000000e-30 : f32
      %113 = vector.broadcast %cst_73 : f32 to vector<8x128xf32>
      %114 = arith.maximumf %108, %113 : vector<8x128xf32>
      %115 = math.log %114 : vector<8x128xf32>
      %116 = arith.addf %112, %115 : vector<8x128xf32>
      %c0_74 = arith.constant 0 : index
      %c0_75 = arith.constant 0 : index
      %117 = vector.load %arg8[%c0_74, %c0_75] : memref<8x128xf32, #tpu.memory_space<vmem>>, vector<8x128xf32>
      tpu.vector_store %arg8[%c0_74, %c0_75], %116 {strides = array<i32>} : memref<8x128xf32, #tpu.memory_space<vmem>>, vector<8x128xf32>,
    } else {
    }
    %c8_i32_44 = arith.constant 8 : i32
    %63 = arith.muli %arg1, %c8_i32_44 : i32
    %c5_i32 = arith.constant 5 : i32
    %64 = arith.addi %63, %c5_i32 : i32
    %c5 = arith.constant 5 : index
    %c0_45 = arith.constant 0 : index
    %c0_46 = arith.constant 0 : index
    %65 = vector.load %arg2[%c5, %c0_45, %c0_46] : memref<8x8x128xf32, #tpu.memory_space<vmem>>, vector<1x8x128xf32>
    %66 = vector.shape_cast %65 : vector<1x8x128xf32> to vector<8x128xf32>
    %c0_i32_47 = arith.constant 0 : i32
    %67 = arith.cmpi eq, %64, %c0_i32_47 : i32
    %68 = arith.extui %67 : i1 to i32
    %c0_i32_48 = arith.constant 0 : i32
    %69 = arith.cmpi ne, %68, %c0_i32_48 : i32
    scf.if %69 {
      %102 = vector.broadcast %0 : vector<1x128xf32> to vector<8x128xf32>
      %103 = arith.addf %102, %66 : vector<8x128xf32>
      %c0_70 = arith.constant 0 : index
      %c0_71 = arith.constant 0 : index
      %104 = vector.load %arg8[%c0_70, %c0_71] : memref<8x128xf32, #tpu.memory_space<vmem>>, vector<8x128xf32>
      tpu.vector_store %arg8[%c0_70, %c0_71], %103 {strides = array<i32>} : memref<8x128xf32, #tpu.memory_space<vmem>>, vector<8x128xf32>,
    } else {
    }
    %c0_i32_49 = arith.constant 0 : i32
    %70 = arith.cmpi sgt, %64, %c0_i32_49 : i32
    %c12_i32_50 = arith.constant 12 : i32
    %71 = arith.cmpi slt, %64, %c12_i32_50 : i32
    %72 = arith.andi %70, %71 : i1
    %73 = arith.extui %72 : i1 to i32
    %c0_i32_51 = arith.constant 0 : i32
    %74 = arith.cmpi ne, %73, %c0_i32_51 : i32
    scf.if %74 {
      %c0_70 = arith.constant 0 : index
      %c0_71 = arith.constant 0 : index
      %102 = vector.load %arg8[%c0_70, %c0_71] : memref<8x128xf32, #tpu.memory_space<vmem>>, vector<8x128xf32>
      %cst = arith.constant dense<0xFF800000> : vector<8xf32>
      %103 = vector.multi_reduction <maximumf>, %102, %cst [1] : vector<8x128xf32> to vector<8xf32>
      %104 = vector.shape_cast %103 : vector<8xf32> to vector<8x1xf32>
      %105 = vector.broadcast %104 : vector<8x1xf32> to vector<8x128xf32>
      %106 = arith.subf %102, %105 : vector<8x128xf32>
      %107 = math.exp %106 : vector<8x128xf32>
      %cst_72 = arith.constant dense<0.000000e+00> : vector<8x128xf32>
      %108 = tpu.matmul %107, %1, %cst_72 {dimension_numbers = #tpu.dot_dimension_numbers<[1], [0], [0], [1], [0, 0, 1, 1], [], []>} : vector<8x128xf32>, vector<128x128xf32>, vector<8x128xf32> -> vector<8x128xf32>
      %109 = vector.broadcast %104 : vector<8x1xf32> to vector<8x128xf32>
      %110 = arith.addf %66, %109 : vector<8x128xf32>
      %111 = vector.broadcast %2 : vector<1x128xf32> to vector<8x128xf32>
      %112 = arith.addf %110, %111 : vector<8x128xf32>
      %cst_73 = arith.constant 1.000000e-30 : f32
      %113 = vector.broadcast %cst_73 : f32 to vector<8x128xf32>
      %114 = arith.maximumf %108, %113 : vector<8x128xf32>
      %115 = math.log %114 : vector<8x128xf32>
      %116 = arith.addf %112, %115 : vector<8x128xf32>
      %c0_74 = arith.constant 0 : index
      %c0_75 = arith.constant 0 : index
      %117 = vector.load %arg8[%c0_74, %c0_75] : memref<8x128xf32, #tpu.memory_space<vmem>>, vector<8x128xf32>
      tpu.vector_store %arg8[%c0_74, %c0_75], %116 {strides = array<i32>} : memref<8x128xf32, #tpu.memory_space<vmem>>, vector<8x128xf32>,
    } else {
    }
    %c8_i32_52 = arith.constant 8 : i32
    %75 = arith.muli %arg1, %c8_i32_52 : i32
    %c6_i32 = arith.constant 6 : i32
    %76 = arith.addi %75, %c6_i32 : i32
    %c6 = arith.constant 6 : index
    %c0_53 = arith.constant 0 : index
    %c0_54 = arith.constant 0 : index
    %77 = vector.load %arg2[%c6, %c0_53, %c0_54] : memref<8x8x128xf32, #tpu.memory_space<vmem>>, vector<1x8x128xf32>
    %78 = vector.shape_cast %77 : vector<1x8x128xf32> to vector<8x128xf32>
    %c0_i32_55 = arith.constant 0 : i32
    %79 = arith.cmpi eq, %76, %c0_i32_55 : i32
    %80 = arith.extui %79 : i1 to i32
    %c0_i32_56 = arith.constant 0 : i32
    %81 = arith.cmpi ne, %80, %c0_i32_56 : i32
    scf.if %81 {
      %102 = vector.broadcast %0 : vector<1x128xf32> to vector<8x128xf32>
      %103 = arith.addf %102, %78 : vector<8x128xf32>
      %c0_70 = arith.constant 0 : index
      %c0_71 = arith.constant 0 : index
      %104 = vector.load %arg8[%c0_70, %c0_71] : memref<8x128xf32, #tpu.memory_space<vmem>>, vector<8x128xf32>
      tpu.vector_store %arg8[%c0_70, %c0_71], %103 {strides = array<i32>} : memref<8x128xf32, #tpu.memory_space<vmem>>, vector<8x128xf32>,
    } else {
    }
    %c0_i32_57 = arith.constant 0 : i32
    %82 = arith.cmpi sgt, %76, %c0_i32_57 : i32
    %c12_i32_58 = arith.constant 12 : i32
    %83 = arith.cmpi slt, %76, %c12_i32_58 : i32
    %84 = arith.andi %82, %83 : i1
    %85 = arith.extui %84 : i1 to i32
    %c0_i32_59 = arith.constant 0 : i32
    %86 = arith.cmpi ne, %85, %c0_i32_59 : i32
    scf.if %86 {
      %c0_70 = arith.constant 0 : index
      %c0_71 = arith.constant 0 : index
      %102 = vector.load %arg8[%c0_70, %c0_71] : memref<8x128xf32, #tpu.memory_space<vmem>>, vector<8x128xf32>
      %cst = arith.constant dense<0xFF800000> : vector<8xf32>
      %103 = vector.multi_reduction <maximumf>, %102, %cst [1] : vector<8x128xf32> to vector<8xf32>
      %104 = vector.shape_cast %103 : vector<8xf32> to vector<8x1xf32>
      %105 = vector.broadcast %104 : vector<8x1xf32> to vector<8x128xf32>
      %106 = arith.subf %102, %105 : vector<8x128xf32>
      %107 = math.exp %106 : vector<8x128xf32>
      %cst_72 = arith.constant dense<0.000000e+00> : vector<8x128xf32>
      %108 = tpu.matmul %107, %1, %cst_72 {dimension_numbers = #tpu.dot_dimension_numbers<[1], [0], [0], [1], [0, 0, 1, 1], [], []>} : vector<8x128xf32>, vector<128x128xf32>, vector<8x128xf32> -> vector<8x128xf32>
      %109 = vector.broadcast %104 : vector<8x1xf32> to vector<8x128xf32>
      %110 = arith.addf %78, %109 : vector<8x128xf32>
      %111 = vector.broadcast %2 : vector<1x128xf32> to vector<8x128xf32>
      %112 = arith.addf %110, %111 : vector<8x128xf32>
      %cst_73 = arith.constant 1.000000e-30 : f32
      %113 = vector.broadcast %cst_73 : f32 to vector<8x128xf32>
      %114 = arith.maximumf %108, %113 : vector<8x128xf32>
      %115 = math.log %114 : vector<8x128xf32>
      %116 = arith.addf %112, %115 : vector<8x128xf32>
      %c0_74 = arith.constant 0 : index
      %c0_75 = arith.constant 0 : index
      %117 = vector.load %arg8[%c0_74, %c0_75] : memref<8x128xf32, #tpu.memory_space<vmem>>, vector<8x128xf32>
      tpu.vector_store %arg8[%c0_74, %c0_75], %116 {strides = array<i32>} : memref<8x128xf32, #tpu.memory_space<vmem>>, vector<8x128xf32>,
    } else {
    }
    %c8_i32_60 = arith.constant 8 : i32
    %87 = arith.muli %arg1, %c8_i32_60 : i32
    %c7_i32 = arith.constant 7 : i32
    %88 = arith.addi %87, %c7_i32 : i32
    %c7 = arith.constant 7 : index
    %c0_61 = arith.constant 0 : index
    %c0_62 = arith.constant 0 : index
    %89 = vector.load %arg2[%c7, %c0_61, %c0_62] : memref<8x8x128xf32, #tpu.memory_space<vmem>>, vector<1x8x128xf32>
    %90 = vector.shape_cast %89 : vector<1x8x128xf32> to vector<8x128xf32>
    %c0_i32_63 = arith.constant 0 : i32
    %91 = arith.cmpi eq, %88, %c0_i32_63 : i32
    %92 = arith.extui %91 : i1 to i32
    %c0_i32_64 = arith.constant 0 : i32
    %93 = arith.cmpi ne, %92, %c0_i32_64 : i32
    scf.if %93 {
      %102 = vector.broadcast %0 : vector<1x128xf32> to vector<8x128xf32>
      %103 = arith.addf %102, %90 : vector<8x128xf32>
      %c0_70 = arith.constant 0 : index
      %c0_71 = arith.constant 0 : index
      %104 = vector.load %arg8[%c0_70, %c0_71] : memref<8x128xf32, #tpu.memory_space<vmem>>, vector<8x128xf32>
      tpu.vector_store %arg8[%c0_70, %c0_71], %103 {strides = array<i32>} : memref<8x128xf32, #tpu.memory_space<vmem>>, vector<8x128xf32>,
    } else {
    }
    %c0_i32_65 = arith.constant 0 : i32
    %94 = arith.cmpi sgt, %88, %c0_i32_65 : i32
    %c12_i32_66 = arith.constant 12 : i32
    %95 = arith.cmpi slt, %88, %c12_i32_66 : i32
    %96 = arith.andi %94, %95 : i1
    %97 = arith.extui %96 : i1 to i32
    %c0_i32_67 = arith.constant 0 : i32
    %98 = arith.cmpi ne, %97, %c0_i32_67 : i32
    scf.if %98 {
      %c0_70 = arith.constant 0 : index
      %c0_71 = arith.constant 0 : index
      %102 = vector.load %arg8[%c0_70, %c0_71] : memref<8x128xf32, #tpu.memory_space<vmem>>, vector<8x128xf32>
      %cst = arith.constant dense<0xFF800000> : vector<8xf32>
      %103 = vector.multi_reduction <maximumf>, %102, %cst [1] : vector<8x128xf32> to vector<8xf32>
      %104 = vector.shape_cast %103 : vector<8xf32> to vector<8x1xf32>
      %105 = vector.broadcast %104 : vector<8x1xf32> to vector<8x128xf32>
      %106 = arith.subf %102, %105 : vector<8x128xf32>
      %107 = math.exp %106 : vector<8x128xf32>
      %cst_72 = arith.constant dense<0.000000e+00> : vector<8x128xf32>
      %108 = tpu.matmul %107, %1, %cst_72 {dimension_numbers = #tpu.dot_dimension_numbers<[1], [0], [0], [1], [0, 0, 1, 1], [], []>} : vector<8x128xf32>, vector<128x128xf32>, vector<8x128xf32> -> vector<8x128xf32>
      %109 = vector.broadcast %104 : vector<8x1xf32> to vector<8x128xf32>
      %110 = arith.addf %90, %109 : vector<8x128xf32>
      %111 = vector.broadcast %2 : vector<1x128xf32> to vector<8x128xf32>
      %112 = arith.addf %110, %111 : vector<8x128xf32>
      %cst_73 = arith.constant 1.000000e-30 : f32
      %113 = vector.broadcast %cst_73 : f32 to vector<8x128xf32>
      %114 = arith.maximumf %108, %113 : vector<8x128xf32>
      %115 = math.log %114 : vector<8x128xf32>
      %116 = arith.addf %112, %115 : vector<8x128xf32>
      %c0_74 = arith.constant 0 : index
      %c0_75 = arith.constant 0 : index
      %117 = vector.load %arg8[%c0_74, %c0_75] : memref<8x128xf32, #tpu.memory_space<vmem>>, vector<8x128xf32>
      tpu.vector_store %arg8[%c0_74, %c0_75], %116 {strides = array<i32>} : memref<8x128xf32, #tpu.memory_space<vmem>>, vector<8x128xf32>,
    } else {
    }
    %c1_i32_68 = arith.constant 1 : i32
    %99 = arith.cmpi eq, %arg1, %c1_i32_68 : i32
    %100 = arith.extui %99 : i1 to i32
    %c0_i32_69 = arith.constant 0 : i32
    %101 = arith.cmpi ne, %100, %c0_i32_69 : i32
    scf.if %101 {
      %c0_70 = arith.constant 0 : index
      %c0_71 = arith.constant 0 : index
      %102 = vector.load %arg8[%c0_70, %c0_71] : memref<8x128xf32, #tpu.memory_space<vmem>>, vector<8x128xf32>
      %c0_72 = arith.constant 0 : index
      %c0_73 = arith.constant 0 : index
      %103 = vector.load %arg4[%c0_72, %c0_73] : memref<1x128xf32, #tpu.memory_space<vmem>>, vector<1x128xf32>
      %104 = vector.broadcast %103 : vector<1x128xf32> to vector<8x128xf32>
      %105 = arith.addf %102, %104 : vector<8x128xf32>
      %cst = arith.constant dense<0xFF800000> : vector<8xf32>
      %106 = vector.multi_reduction <maximumf>, %105, %cst [1] : vector<8x128xf32> to vector<8xf32>
      %107 = vector.shape_cast %106 : vector<8xf32> to vector<8x1xf32>
      %108 = vector.broadcast %107 : vector<8x1xf32> to vector<8x128xf32>
      %109 = arith.subf %105, %108 : vector<8x128xf32>
      %110 = math.exp %109 : vector<8x128xf32>
      %cst_74 = arith.constant dense<0.000000e+00> : vector<8xf32>
      %111 = vector.multi_reduction <add>, %110, %cst_74 [1] : vector<8x128xf32> to vector<8xf32>
      %112 = vector.shape_cast %111 : vector<8xf32> to vector<8x1xf32>
      %113 = math.log %112 : vector<8x1xf32>
      %114 = arith.addf %107, %113 : vector<8x1xf32>
      %c0_75 = arith.constant 0 : index
      %c0_76 = arith.constant 0 : index
      %115 = vector.load %arg7[%c0_75, %c0_76] : memref<8x1xf32, #tpu.memory_space<vmem>>, vector<8x1xf32>
      tpu.vector_store %arg7[%c0_75, %c0_76], %114 {strides = array<i32>} : memref<8x1xf32, #tpu.memory_space<vmem>>, vector<8x1xf32>,
    } else {
    }
    return
  }
  func.func @transform_0(%arg0: i32, %arg1: i32) -> (i32, i32, i32) {
    %c0_i32 = arith.constant 0 : i32
    %c0_i32_0 = arith.constant 0 : i32
    return %arg1, %arg0, %c0_i32 : i32, i32, i32
  }
  func.func @transform_1(%arg0: i32, %arg1: i32) -> (i32, i32) {
    %c0_i32 = arith.constant 0 : i32
    %c0_i32_0 = arith.constant 0 : i32
    %c0_i32_1 = arith.constant 0 : i32
    return %c0_i32, %c0_i32_0 : i32, i32
  }
  func.func @transform_2(%arg0: i32, %arg1: i32) -> (i32, i32) {
    %c0_i32 = arith.constant 0 : i32
    %c0_i32_0 = arith.constant 0 : i32
    %c0_i32_1 = arith.constant 0 : i32
    return %c0_i32, %c0_i32_0 : i32, i32
  }
  func.func @transform_3(%arg0: i32, %arg1: i32) -> (i32, i32) {
    %c0_i32 = arith.constant 0 : i32
    %c0_i32_0 = arith.constant 0 : i32
    %c0_i32_1 = arith.constant 0 : i32
    return %c0_i32, %c0_i32_0 : i32, i32
  }
  func.func @transform_4(%arg0: i32, %arg1: i32) -> (i32, i32) {
    %c0_i32 = arith.constant 0 : i32
    %c0_i32_0 = arith.constant 0 : i32
    %c0_i32_1 = arith.constant 0 : i32
    return %c0_i32, %c0_i32_0 : i32, i32
  }
  func.func @transform_5(%arg0: i32, %arg1: i32) -> (i32, i32) {
    %c0_i32 = arith.constant 0 : i32
    %c0_i32_0 = arith.constant 0 : i32
    return %arg0, %c0_i32 : i32, i32
  }
}

</mosaic_0001>

<bundles_post_ra>
// kernel: tpu_custom_call.1
= control target key start
LH: loop header
LB: loop body
LE: loop exit
PB: predicated region body
PF: predicated region fallthrough
CT: control target
= control target key end

     0   :  { %s2670_s0 = inlined_call_operand.hbm [shape: f32[16,16,128], index: 0, kind: input, shape index: {}]   ;;  %s2671_s1 = inlined_call_operand.vmem [shape: f32[1,128], index: 1, kind: input, shape index: {}]   ;;  %s2672_s2 = inlined_call_operand.vmem [shape: f32[1,128], index: 2, kind: input, shape index: {}]   ;;  %s2673_s3 = inlined_call_operand.hbm [shape: f32[128,128], index: 3, kind: input, shape index: {}]   ;;  %s2674_s4 = inlined_call_operand.vmem [shape: f32[1,128], index: 4, kind: input, shape index: {}]   ;;  %s2675_s5 = inlined_call_operand.vmem [shape: f32[16,1], index: 5, kind: output, shape index: {}]  }
   0x1   :  { %2683 = sst [smem:[#allocation9_spill]] %s2673_s3 }
   0x2   :  { %10 = vsyncpa [#allocation4], 0 }
   0x3   :  { %12 = vsyncpa [#allocation4 + $0x1], 0 }
   0x4   :  { %13 = vsyncpa [#allocation6], 0  ;;  %s2261_s18 = smov 0   ;;  %s2263_s19 = smov 0  }
   0x5   :  { %s2265_s20 = smov 0   ;;  %s2267_s21 = smov 0  }
   0x6   :  { %s2269_s22 = smov 0   ;;  %s2271_s23 = smov 0  }
   0x7   :  { %s2273_s24 = smov 0   ;;  %s2275_s25 = smov 0  }
   0x8 LB: > { %s1285_s26 = sadd.s32 4294967295, %s2200_s25   ;;  %p47_p0 = scmp.ne.s32.totalorder %s2180_s20, %s2176_s19  ;;  %s2200_s25 = sphi %s2275_s25, %s19_s25   ;;  %s2196_s24 = sphi %s2273_s24, %s2703_s24   ;;  %s2192_s23 = sphi %s2271_s23, %s2702_s23   ;;  %s2188_s22 = sphi %s2269_s22, %s2701_s22   ;;  %s2184_s21 = sphi %s2267_s21, %s2700_s21   ;;  %s2180_s20 = sphi %s2265_s20, %s2699_s20   ;;  %s2176_s19 = sphi %s2263_s19, %s2698_s19   ;;  %s2172_s18 = sphi %s2261_s18, %s2697_s18  }
   0x9   : > { %p48_p1 = scmp.eq.s32.totalorder %s2200_s25, 0  ;;  %p53_p2 = scmp.ne.s32.totalorder %s2176_s19, %s2172_s18 }
   0xa   : > { %p2305_p3 = scmp.eq.s32.totalorder %s1285_s26, 0  ;;  %p1287_p5 = scmp.ge.s32.totalorder %s2200_s25, 1 }
   0xb   : > { %p49_p4 = por %p48_p1, %p47_p0  ;;  %p174_p7 = scmp.lt.s32.totalorder %s2200_s25, 5 }
   0xc   : > { %s2684_s28 = scalar_select %p2305_p3, 1, 0 }
   0xd   : > { %p2312_p6 = por %p2305_p3, %p53_p2  ;;  %p2317_p8 = pnand %p1287_p5, %p174_p7 }
   0xe   : > { %s2202_s6 = smov [#allocation5]   ;;  %p1942_p10 = scmp.lt.s32.totalorder %s2200_s25, 4 }
   0xf   : > { %s2685_s29 = scalar_select %p2312_p6, 1, 0 }
  0x10   : > { %s2686_s30 = scalar_select %p2317_p8, 1, 0 }
  0x11   : > { %s192_s7 = sshll.u32 %s2202_s6, 4  ;;  %p1933_p9 = pneg %p2317_p8  ;;  %s193_s7 = int_to_ptr.vmem [resolvable:$true] %s192_s7 }
  0x12   : > { %p2330_p12 = pnand %p1942_p10, %p49_p4  ;;  %s2689_s3 = sld [smem:[#allocation9_spill]] }
  0x13   : > { %p2326_p11 = pnand %p1933_p9, %p2305_p3 }
  0x14   : > { %s2688_s9 = scalar_select %p2330_p12, 1, 0 }
  0x15   : > { %p2074_p0 = pneg %p2326_p11 }
  0x18   : > { %s2072_s12 = scalar_lea.hbm %s2689_s3, 2048 }
  0x19   : > { %p2073_p13 = scmp.ne.s32.totalorder %s2689_s3, %s2072_s12  ;;  %p2079_p5 = scmp.lt.u32.totalorder %s2072_s12, %s2689_s3 }
  0x1b   : > { %p2075_p1 = pnand %p2074_p0, %p2073_p13 }
  0x1d   : > { %p2076_p2 = pneg %p2075_p1 }
  0x1f   : > { %p2081_p4 = pnand %p2079_p5, %p2076_p2 }
  0x21   : > { %2084 = shalt.err (!%p2081_p4)
}
  0x22   : > { %s2085_s17 = scalar_lea.vmem %s193_s7, 2048  ;;  %p2093_p3 = scmp.lt.s32.totalorder %s193_s7, %s193_s7 }
  0x23   : > { %p2086_p7 = scmp.ne.s32.totalorder %s193_s7, %s2085_s17  ;;  %p2094_p6 = scmp.lt.s32.totalorder %s2085_s17, %s2085_s17 }
  0x25   : > { %p2088_p9 = pnand %p2086_p7, %p2074_p0  ;;  %p2095_p8 = por %p2094_p6, %p2093_p3 }
  0x27   : > { %p2089_p10 = pneg %p2088_p9 }
  0x29   : > { %p2096_p12 = pnand %p2095_p8, %p2089_p10 }
  0x2b   : > { %2099 = shalt.err (!%p2096_p12)
}
  0x2c   : > { %s2681_s18 = smov 128   ;;  %s2682_s26 = smov 8  }
  0x2d   : > { %1936 = dma.hbm_to_vmem [thread:$0]  (!%p2326_p11), %s2689_s3, 2048, %s193_s7, [#allocation6], %s2681_s18, %s2681_s18, %s2682_s26  }
  0x2e   : > { %s28_s11 = sadd.s32 1, %s2192_s23  ;;  %s31_s12 = sadd.s32 1, %s2196_s24 }
  0x2f   : > { %p29_p3 = scmp.ge.s32.totalorder %s28_s11, 2  ;;  %s209_s13 = sand.u32 1, %s2180_s20  }
  0x30   : > { %s1290_s14 = sshll.u32 %s209_s13, 6  ;;  %s1318_s8 = sshll.u32 %s2192_s23, 4 }
  0x31   : > { %s2705_s11 = smov (%p29_p3, %s28_s11), 0  ;;  %s2707_s12 = smov (!%p29_p3, %s31_s12), %s2196_s24 }
  0x32   : > { %s35_s15 = ssub.s32 %s2192_s23, %s2705_s11  ;;  %p33_p6 = scmp.ge.s32.totalorder %s2707_s12, 2 }
  0x33   : > { %s219_s16 = sadd.s32 %s2196_s24, %s1318_s8  ;;  %s213_s17 = scalar_lea.vmem [#allocation3], %s1290_s14 }
  0x34   : > { %s222_s27 = sshll.u32 %s213_s17, 4  ;;  %s2709_s12 = smov (%p33_p6, %s2707_s12), 0  ;;  %s2365_s27 = int_to_ptr.vmem [resolvable:$true] %s222_s27 }
  0x35   : > { %s1293_s7 = sshll.u32 %s219_s16, 7  ;;  %s36_s6 = ssub.s32 %s2196_s24, %s2709_s12 }
  0x36   : > { %s2372_s26 = scalar_lea.hbm %s2670_s0, %s1293_s7  ;;  %s2374_s3 = sor.u32 %s36_s6, %s35_s15 }
  0x37   : > { %p38_p8 = scmp.eq.s32.totalorder %s2374_s3, 0  ;;  %s2377_s14 = scalar_lea.sflag [#allocation4], %s209_s13 }
  0x38   : > { %s2100_s8 = scalar_lea.hbm %s2372_s26, 1024  ;;  %p2690_p12 = scmp.ne.s32.totalorder %s2688_s9, 0 }
  0x39   : > { %p2101_p11 = scmp.ne.s32.totalorder %s2372_s26, %s2100_s8  ;;  %s2105_s17 = scalar_lea.hbm %s2670_s0, 4096 }
  0x3a   : > { %p2102_p13 = pneg %p2690_p12  ;;  %p2106_p2 = scmp.lt.u32.totalorder %s2372_s26, %s2670_s0 }
  0x3b   : > { %p2107_p5 = scmp.lt.u32.totalorder %s2105_s17, %s2100_s8  ;;  %p2109_p7 = scmp.lt.u32.totalorder %s2100_s8, %s2372_s26 }
  0x3c   : > { %p2103_p0 = pnand %p2102_p13, %p2101_p11 }
  0x3d   : > { %p2108_p4 = por %p2107_p5, %p2106_p2 }
  0x3e   : > { %p2104_p1 = pneg %p2103_p0 }
  0x3f   : > { %p2110_p9 = por %p2109_p7, %p2108_p4 }
  0x41   : > { %p2111_p10 = pnand %p2110_p9, %p2104_p1 }
  0x43   : > { %2114 = shalt.err (!%p2111_p10)
}
  0x44   : > { %s2115_s13 = scalar_lea.vmem %s2365_s27, 1024  ;;  %s2205_s15 = smov [#allocation3]  }
  0x45   : > { %p2116_p3 = scmp.ne.s32.totalorder %s2365_s27, %s2115_s13  ;;  %s2120_s6 = sshll.u32 %s2205_s15, 4  ;;  %s2121_s6 = int_to_ptr.vmem [resolvable:$false] %s2120_s6 }
  0x46   : > { %s2122_s18 = scalar_lea.vmem %s2121_s6, 2048  ;;  %p2123_p0 = scmp.lt.s32.totalorder %s2365_s27, %s2121_s6 }
  0x47   : > { %p2118_p6 = pnand %p2116_p3, %p2102_p13  ;;  %p2124_p2 = scmp.lt.s32.totalorder %s2122_s18, %s2115_s13 }
  0x49   : > { %p2119_p11 = pneg %p2118_p6  ;;  %p2125_p5 = por %p2124_p2, %p2123_p0 }
  0x4b   : > { %p2126_p4 = pnand %p2125_p5, %p2119_p11 }
  0x4d   : > { %2129 = shalt.err (!%p2126_p4)
}
  0x4e   : > { %s2206_s8 = smov 256   ;;  %s2691_s16 = smov 8  }
  0x4f   : > { %s2692_s17 = smov 128   ;;  %s2693_s7 = sadd.s32 1, %s2180_s20 }
  0x50   : > { %1940 = dma.hbm_to_vmem [thread:$0]  (!%p2690_p12), %s2372_s26, 1024, %s2365_s27, %s2377_s14, %s2206_s8, %s2692_s17, %s2691_s16  }
  0x51   : > { %s2412_s10 = scalar_select %p38_p8, %s2180_s20, %s2693_s7  }
  0x52   : > { %p2694_p13 = scmp.ne.s32.totalorder %s2686_s30, 0 }
  0x53   : > { %s236_s13 = sand.u32 (!%p2694_p13), 1, %s2176_s19   ;;  %p2695_p1 = scmp.ne.s32.totalorder (!%p2694_p13), %s2685_s29, 0 }
  0x54   : > { %234 = sbr.rel (%p2694_p13) target bundleno = 3675 (0xe5b), region = 40  ;;  %s1295_s9 = sshll.u32 (!%p2694_p13), %s236_s13, 6 }
  0x55   : > { %s237_s15 = scalar_lea.sflag (!%p2694_p13), [#allocation4], %s236_s13  ;;  %s2417_s6 = scalar_lea.vmem (!%p2694_p13), [#allocation3], %s1295_s9 }
  0x5b   : > { %2163 = dma.done.wait (%p2695_p1), %s237_s15, 1024  }
  0x5c   : > { %2165 = vsyncadd (%p2695_p1), %s237_s15, 4294966272  ;;  %p2696_p12 = scmp.ne.s32.totalorder %s2684_s28, 0 }
  0x5e   : > { %2167 = dma.done.wait (%p2696_p12), [#allocation6], 2048  }
  0x5f   : > { %2169 = vsyncadd (%p2696_p12), [#allocation6], 4294965248  ;;  %p271_p8 = scmp.lt.s32.totalorder %s2188_s22, 1  ;;  %s2429_s3 = sshll.u32 %s2184_s21, 3  ;;  %v2440_v0 = vld [vmem:[%s2671_s1] sm:$0x1] }
  0x60   : > { %v2442_v1 = vld [vmem:[#allocation5] sm:$0xff]  ;;  %v2444_v2 = vld [vmem:[#allocation5 + $0x8] sm:$0xff]  ;;  %v2446_v3 = vld [vmem:[#allocation5 + $0x10] sm:$0xff]  ;;  %p1299_p7 = scmp.ne.s32.totalorder %s2429_s3, 0 }
  0x61   : > { %s2711_s22 = smov (!%p271_p8, %s2188_s22), 1  ;;  %v2448_v4 = vld [vmem:[#allocation5 + $0x18] sm:$0xff]  ;;  %v2450_v5 = vld [vmem:[#allocation5 + $0x20] sm:$0xff]  ;;  %v2452_v6 = vld [vmem:[#allocation5 + $0x28] sm:$0xff]  ;;  %v300_v19 = vlaneseq (!%p1299_p7) }
  0x62   : > { %s1297_s27 = sshll.u32 %s2711_s22, 3  ;;  %v2454_v7 = vld [vmem:[#allocation5 + $0x30] sm:$0xff]  ;;  %v2456_v8 = vld [vmem:[#allocation5 + $0x38] sm:$0xff]  ;;  %v2458_v9 = vld [vmem:[#allocation5 + $0x40] sm:$0xff]  ;;  %298 = sbr.rel (%p1299_p7) target bundleno = 108 (0x6c), region = 52 }
  0x63   : > { %s2435_s14 = scalar_lea.vmem %s2675_s5, %s1297_s27  ;;  %v2460_v10 = vld [vmem:[#allocation5 + $0x48] sm:$0xff]  ;;  %v2462_v11 = vld [vmem:[#allocation5 + $0x50] sm:$0xff]  ;;  %v2464_v12 = vld [vmem:[#allocation5 + $0x58] sm:$0xff]  ;;  %v301_v20 = vshrl.u32 (!%p1299_p7), %v300_v19, 7 }
  0x64   : > { %v2466_v13 = vld [vmem:[#allocation5 + $0x60] sm:$0xff]  ;;  %v2468_v14 = vld [vmem:[#allocation5 + $0x68] sm:$0xff]  ;;  %v2470_v15 = vld [vmem:[#allocation5 + $0x70] sm:$0xff] }
  0x65   : > { %v2472_v16 = vld [vmem:[#allocation5 + $0x78] sm:$0xff]  ;;  %v294_v18 = vld [vmem:[%s2417_s6] sm:$0xff]  ;;  %v302_v21 = vsub.s32 (!%p1299_p7), 0, %v301_v20 }
  0x66   : > { %v2477_v17 = vld [vmem:[%s2674_s4] sm:$0x1] }
  0x67   : > { %v303_v22 = vrot.slane (!%p1299_p7), %v2440_v0, %v302_v21 }
  0x69   : > { %v305_v23 = vadd.f32 %v303_v22, %v294_v18 }
  0x6b   : > { %306 = vst [vmem:[#allocation2] sm:$0xff] %v305_v23 }
  0x6c PF: > { %p307_p9 = scmp.gt.s32.totalorder %s2429_s3, 0  ;;  %p308_p10 = scmp.lt.s32.totalorder %s2429_s3, 12 }
  0x6e   : > { %p309_p3 = pnand %p308_p10, %p307_p9 }
  0x6f   : > { %v1736_v25 = vpack.c.bf16 (!%p309_p3), %v2444_v2, %v2442_v1  ;;  %v2207_v26 = vmov (!%p309_p3), 0.0|0.0   ;;  %v1739_v27 = vpack.c.bf16 (!%p309_p3), %v2448_v4, %v2446_v3  ;;  %v1742_v28 = vpack.c.bf16 (!%p309_p3), %v2452_v6, %v2450_v5 }
  0x70   : > { %312 = sbr.rel (%p309_p3) target bundleno = 502 (0x1f6), region = 56  ;;  %1735 = vmatprep.subr.bf16.mxu0 (!%p309_p3), %v2207_v26  ;;  %v1745_v29 = vpack.c.bf16 (!%p309_p3), %v2456_v8, %v2454_v7  ;;  %v1748_v30 = vpack.c.bf16 (!%p309_p3), %v2460_v10, %v2458_v9  ;;  %v1751_v31 = vpack.c.bf16 (!%p309_p3), %v2464_v12, %v2462_v11  ;;  %vm2208_vm0 = vmmov (!%p309_p3), 0  }
  0x71   : > { %1737 = vmatpush3.bf16.msra.mxu0 (!%p309_p3), %v1736_v25  ;;  %v2209_v32 = vmov (!%p309_p3), 0.0   ;;  %v1754_v33 = vpack.c.bf16 (!%p309_p3), %v2468_v14, %v2466_v13  ;;  %v1757_v34 = vpack.c.bf16 (!%p309_p3), %v2472_v16, %v2470_v15  ;;  %v391_v39 = vlaneseq (!%p309_p3) }
  0x72   : > { %v313_v24 = vld [vmem:[#allocation2] sm:$0xff] (!%p309_p3)  ;;  %1738 = vmatprep.subr.bf16.mxu0 (!%p309_p3), %v2207_v26  ;;  %1487 = vmatprep.mubr.msk.f32.mxu0 (!%p309_p3), %vm2208_vm0, %v2209_v32 }
  0x73   : > { %314 = vmax.xlane.f32.xlu0 (!%p309_p3), %v313_v24  ;;  %v392_v43 = vshrl.u32 (!%p309_p3), %v391_v39, 7 }
  0x75   : > { %1740 = vmatpush3.bf16.msra.mxu0 (!%p309_p3), %v1739_v27  ;;  %v393_v44 = vsub.s32 (!%p309_p3), 0, %v392_v43 }
  0x76   : > { %1741 = vmatprep.subr.bf16.mxu0 (!%p309_p3), %v2207_v26 }
  0x77   : > { %v394_v46 = vrot.slane %v2477_v17, %v393_v44 }
  0x79   : > { %1743 = vmatpush3.bf16.msra.mxu0 %v1742_v28 }
  0x7a   : > { %1744 = vmatprep.subr.bf16.mxu0 %v2207_v26 }
  0x7d   : > { %1746 = vmatpush3.bf16.msra.mxu0 %v1745_v29 }
  0x7e   : > { %1747 = vmatprep.subr.bf16.mxu0 %v2207_v26 }
  0x81   : > { %1749 = vmatpush3.bf16.msra.mxu0 %v1748_v30 }
  0x82   : > { %1750 = vmatprep.subr.bf16.mxu0 %v2207_v26 }
  0x85   : > { %1752 = vmatpush3.bf16.msra.mxu0 %v1751_v31 }
  0x86   : > { %1753 = vmatprep.subr.bf16.mxu0 %v2207_v26 }
  0x89   : > { %1755 = vmatpush3.bf16.msra.mxu0 %v1754_v33 }
  0x8a   : > { %1756 = vmatprep.subr.bf16.mxu0 %v2207_v26 }
  0x8d   : > { %1758 = vmatpush3.bf16.msra.mxu0 %v1757_v34 }
 0x100   : > { %v315_v35 = vpop.xlane.xlu0 %314 }
 0x101   : > { %v316_v36 = vsub.f32 %v313_v24, %v315_v35  ;;  %v389_v45 = vadd.f32 %v315_v35, %v294_v18 }
 0x103   : > { %v317_v37 = vmul.f32 1.442695, %v316_v36  ;;  %v396_v48 = vadd.f32 %v394_v46, %v389_v45 }
 0x105   : > { %2036 = vpow2.f32 %v317_v37 }
 0x10f   : > { %v2037_v38 = vpop.eup %2036 }
 0x110   : > { %1488 = vmatmul.mubr.f32.vlgmr.msra.gmra.mrb[0].mxu0 %v2037_v38 }
 0x1e3   : > { %v385_v40 = vpop.f32.mrb[0].mxu0 }
 0x1e4   : > { %v397_v41 = vmax.f32 %v385_v40, 1e-30  ;;  %v1489_v42 = vpop.f32.mrb[1].mxu0 }
 0x1e6   : > { %2038 = vlog2.f32 %v397_v41 }
 0x1f0   : > { %v2039_v47 = vpop.eup %2038 }
 0x1f1   : > { %v399_v49 = vmul.f32 0.6931472, %v2039_v47 }
 0x1f3   : > { %v400_v50 = vadd.f32 %v399_v49, %v396_v48 }
 0x1f5   : > { %401 = vst [vmem:[#allocation2] sm:$0xff] %v400_v50 }
 0x1f6 PF: > { %s402_s8 = sadd.s32 1, %s2429_s3  ;;  %v1300_v51 = vld [vmem:[%s2417_s6 + $0x8] sm:$0xff] }
 0x1f7   : > { %p1301_p6 = scmp.ne.s32.totalorder %s402_s8, 0 }
 0x1f8   : > { %v410_v52 = vlaneseq (!%p1301_p6) }
 0x1f9   : > { %408 = sbr.rel (%p1301_p6) target bundleno = 515 (0x203), region = 60 }
 0x1fa   : > { %v411_v53 = vshrl.u32 (!%p1301_p6), %v410_v52, 7 }
 0x1fc   : > { %v412_v54 = vsub.s32 (!%p1301_p6), 0, %v411_v53 }
 0x1fe   : > { %v413_v55 = vrot.slane (!%p1301_p6), %v2440_v0, %v412_v54 }
 0x200   : > { %v415_v56 = vadd.f32 %v1300_v51, %v413_v55 }
 0x202   : > { %416 = vst [vmem:[#allocation2] sm:$0xff] %v415_v56 }
 0x203 PF: > { %p417_p11 = scmp.gt.s32.totalorder %s402_s8, 0  ;;  %p418_p0 = scmp.lt.s32.totalorder %s402_s8, 12 }
 0x205   : > { %p419_p2 = pnand %p418_p0, %p417_p11 }
 0x206   : > { %v1760_v58 = vpack.c.bf16 (!%p419_p2), %v2444_v2, %v2442_v1  ;;  %v2210_v59 = vmov (!%p419_p2), 0.0|0.0   ;;  %v1763_v60 = vpack.c.bf16 (!%p419_p2), %v2448_v4, %v2446_v3  ;;  %v1766_v61 = vpack.c.bf16 (!%p419_p2), %v2452_v6, %v2450_v5 }
 0x207   : > { %422 = sbr.rel (%p419_p2) target bundleno = 909 (0x38d), region = 64  ;;  %1759 = vmatprep.subr.bf16.mxu0 (!%p419_p2), %v2210_v59  ;;  %v1769_v62 = vpack.c.bf16 (!%p419_p2), %v2456_v8, %v2454_v7  ;;  %v1772_v63 = vpack.c.bf16 (!%p419_p2), %v2460_v10, %v2458_v9  ;;  %v1775_v18 = vpack.c.bf16 (!%p419_p2), %v2464_v12, %v2462_v11  ;;  %vm2211_vm1 = vmmov (!%p419_p2), 0  }
 0x208   : > { %1761 = vmatpush3.bf16.msra.mxu0 (!%p419_p2), %v1760_v58  ;;  %v2212_v19 = vmov (!%p419_p2), 0.0   ;;  %v1778_v20 = vpack.c.bf16 (!%p419_p2), %v2468_v14, %v2466_v13  ;;  %v1781_v21 = vpack.c.bf16 (!%p419_p2), %v2472_v16, %v2470_v15  ;;  %v501_v26 = vlaneseq (!%p419_p2) }
 0x209   : > { %v423_v57 = vld [vmem:[#allocation2] sm:$0xff] (!%p419_p2)  ;;  %1762 = vmatprep.subr.bf16.mxu0 (!%p419_p2), %v2210_v59  ;;  %1522 = vmatprep.mubr.msk.f32.mxu0 (!%p419_p2), %vm2211_vm1, %v2212_v19 }
 0x20a   : > { %424 = vmax.xlane.f32.xlu0 (!%p419_p2), %v423_v57  ;;  %v502_v30 = vshrl.u32 (!%p419_p2), %v501_v26, 7 }
 0x20c   : > { %1764 = vmatpush3.bf16.msra.mxu0 (!%p419_p2), %v1763_v60  ;;  %v503_v31 = vsub.s32 (!%p419_p2), 0, %v502_v30 }
 0x20d   : > { %1765 = vmatprep.subr.bf16.mxu0 (!%p419_p2), %v2210_v59 }
 0x20e   : > { %v504_v33 = vrot.slane %v2477_v17, %v503_v31 }
 0x210   : > { %1767 = vmatpush3.bf16.msra.mxu0 %v1766_v61 }
 0x211   : > { %1768 = vmatprep.subr.bf16.mxu0 %v2210_v59 }
 0x214   : > { %1770 = vmatpush3.bf16.msra.mxu0 %v1769_v62 }
 0x215   : > { %1771 = vmatprep.subr.bf16.mxu0 %v2210_v59 }
 0x218   : > { %1773 = vmatpush3.bf16.msra.mxu0 %v1772_v63 }
 0x219   : > { %1774 = vmatprep.subr.bf16.mxu0 %v2210_v59 }
 0x21c   : > { %1776 = vmatpush3.bf16.msra.mxu0 %v1775_v18 }
 0x21d   : > { %1777 = vmatprep.subr.bf16.mxu0 %v2210_v59 }
 0x220   : > { %1779 = vmatpush3.bf16.msra.mxu0 %v1778_v20 }
 0x221   : > { %1780 = vmatprep.subr.bf16.mxu0 %v2210_v59 }
 0x224   : > { %1782 = vmatpush3.bf16.msra.mxu0 %v1781_v21 }
 0x297   : > { %v425_v22 = vpop.xlane.xlu0 %424 }
 0x298   : > { %v426_v23 = vsub.f32 %v423_v57, %v425_v22  ;;  %v499_v32 = vadd.f32 %v1300_v51, %v425_v22 }
 0x29a   : > { %v427_v24 = vmul.f32 1.442695, %v426_v23  ;;  %v506_v35 = vadd.f32 %v504_v33, %v499_v32 }
 0x29c   : > { %2040 = vpow2.f32 %v427_v24 }
 0x2a6   : > { %v2041_v25 = vpop.eup %2040 }
 0x2a7   : > { %1523 = vmatmul.mubr.f32.vlgmr.msra.gmra.mrb[0].mxu0 %v2041_v25 }
 0x37a   : > { %v495_v27 = vpop.f32.mrb[0].mxu0 }
 0x37b   : > { %v507_v28 = vmax.f32 %v495_v27, 1e-30  ;;  %v1524_v29 = vpop.f32.mrb[1].mxu0 }
 0x37d   : > { %2042 = vlog2.f32 %v507_v28 }
 0x387   : > { %v2043_v34 = vpop.eup %2042 }
 0x388   : > { %v509_v36 = vmul.f32 0.6931472, %v2043_v34 }
 0x38a   : > { %v510_v37 = vadd.f32 %v509_v36, %v506_v35 }
 0x38c   : > { %511 = vst [vmem:[#allocation2] sm:$0xff] %v510_v37 }
 0x38d PF: > { %s512_s16 = sadd.s32 2, %s2429_s3  ;;  %v1302_v38 = vld [vmem:[%s2417_s6 + $0x10] sm:$0xff] }
 0x38e   : > { %p1303_p5 = scmp.ne.s32.totalorder %s512_s16, 0 }
 0x38f   : > { %v520_v39 = vlaneseq (!%p1303_p5) }
 0x390   : > { %518 = sbr.rel (%p1303_p5) target bundleno = 922 (0x39a), region = 68 }
 0x391   : > { %v521_v40 = vshrl.u32 (!%p1303_p5), %v520_v39, 7 }
 0x393   : > { %v522_v41 = vsub.s32 (!%p1303_p5), 0, %v521_v40 }
 0x395   : > { %v523_v42 = vrot.slane (!%p1303_p5), %v2440_v0, %v522_v41 }
 0x397   : > { %v525_v43 = vadd.f32 %v1302_v38, %v523_v42 }
 0x399   : > { %526 = vst [vmem:[#allocation2] sm:$0xff] %v525_v43 }
 0x39a PF: > { %p527_p4 = scmp.gt.s32.totalorder %s512_s16, 0  ;;  %p528_p13 = scmp.lt.s32.totalorder %s512_s16, 12 }
 0x39c   : > { %p529_p1 = pnand %p528_p13, %p527_p4 }
 0x39d   : > { %v1784_v45 = vpack.c.bf16 (!%p529_p1), %v2444_v2, %v2442_v1  ;;  %v2213_v46 = vmov (!%p529_p1), 0.0|0.0   ;;  %v1787_v47 = vpack.c.bf16 (!%p529_p1), %v2448_v4, %v2446_v3  ;;  %v1790_v48 = vpack.c.bf16 (!%p529_p1), %v2452_v6, %v2450_v5 }
 0x39e   : > { %532 = sbr.rel (%p529_p1) target bundleno = 1316 (0x524), region = 72  ;;  %1783 = vmatprep.subr.bf16.mxu0 (!%p529_p1), %v2213_v46  ;;  %v1793_v49 = vpack.c.bf16 (!%p529_p1), %v2456_v8, %v2454_v7  ;;  %v1796_v50 = vpack.c.bf16 (!%p529_p1), %v2460_v10, %v2458_v9  ;;  %v1799_v51 = vpack.c.bf16 (!%p529_p1), %v2464_v12, %v2462_v11  ;;  %vm2214_vm2 = vmmov (!%p529_p1), 0  }
 0x39f   : > { %1785 = vmatpush3.bf16.msra.mxu0 (!%p529_p1), %v1784_v45  ;;  %v2215_v52 = vmov (!%p529_p1), 0.0   ;;  %v1802_v53 = vpack.c.bf16 (!%p529_p1), %v2468_v14, %v2466_v13  ;;  %v1805_v54 = vpack.c.bf16 (!%p529_p1), %v2472_v16, %v2470_v15  ;;  %v611_v59 = vlaneseq (!%p529_p1) }
 0x3a0   : > { %v533_v44 = vld [vmem:[#allocation2] sm:$0xff] (!%p529_p1)  ;;  %1786 = vmatprep.subr.bf16.mxu0 (!%p529_p1), %v2213_v46  ;;  %1557 = vmatprep.mubr.msk.f32.mxu0 (!%p529_p1), %vm2214_vm2, %v2215_v52 }
 0x3a1   : > { %534 = vmax.xlane.f32.xlu0 (!%p529_p1), %v533_v44  ;;  %v612_v63 = vshrl.u32 (!%p529_p1), %v611_v59, 7 }
 0x3a3   : > { %1788 = vmatpush3.bf16.msra.mxu0 (!%p529_p1), %v1787_v47  ;;  %v613_v18 = vsub.s32 (!%p529_p1), 0, %v612_v63 }
 0x3a4   : > { %1789 = vmatprep.subr.bf16.mxu0 (!%p529_p1), %v2213_v46 }
 0x3a5   : > { %v614_v20 = vrot.slane %v2477_v17, %v613_v18 }
 0x3a7   : > { %1791 = vmatpush3.bf16.msra.mxu0 %v1790_v48 }
 0x3a8   : > { %1792 = vmatprep.subr.bf16.mxu0 %v2213_v46 }
 0x3ab   : > { %1794 = vmatpush3.bf16.msra.mxu0 %v1793_v49 }
 0x3ac   : > { %1795 = vmatprep.subr.bf16.mxu0 %v2213_v46 }
 0x3af   : > { %1797 = vmatpush3.bf16.msra.mxu0 %v1796_v50 }
 0x3b0   : > { %1798 = vmatprep.subr.bf16.mxu0 %v2213_v46 }
 0x3b3   : > { %1800 = vmatpush3.bf16.msra.mxu0 %v1799_v51 }
 0x3b4   : > { %1801 = vmatprep.subr.bf16.mxu0 %v2213_v46 }
 0x3b7   : > { %1803 = vmatpush3.bf16.msra.mxu0 %v1802_v53 }
 0x3b8   : > { %1804 = vmatprep.subr.bf16.mxu0 %v2213_v46 }
 0x3bb   : > { %1806 = vmatpush3.bf16.msra.mxu0 %v1805_v54 }
 0x42e   : > { %v535_v55 = vpop.xlane.xlu0 %534 }
 0x42f   : > { %v536_v56 = vsub.f32 %v533_v44, %v535_v55  ;;  %v609_v19 = vadd.f32 %v1302_v38, %v535_v55 }
 0x431   : > { %v537_v57 = vmul.f32 1.442695, %v536_v56  ;;  %v616_v22 = vadd.f32 %v614_v20, %v609_v19 }
 0x433   : > { %2044 = vpow2.f32 %v537_v57 }
 0x43d   : > { %v2045_v58 = vpop.eup %2044 }
 0x43e   : > { %1558 = vmatmul.mubr.f32.vlgmr.msra.gmra.mrb[0].mxu0 %v2045_v58 }
 0x511   : > { %v605_v60 = vpop.f32.mrb[0].mxu0 }
 0x512   : > { %v617_v61 = vmax.f32 %v605_v60, 1e-30  ;;  %v1559_v62 = vpop.f32.mrb[1].mxu0 }
 0x514   : > { %2046 = vlog2.f32 %v617_v61 }
 0x51e   : > { %v2047_v21 = vpop.eup %2046 }
 0x51f   : > { %v619_v23 = vmul.f32 0.6931472, %v2047_v21 }
 0x521   : > { %v620_v24 = vadd.f32 %v619_v23, %v616_v22 }
 0x523   : > { %621 = vst [vmem:[#allocation2] sm:$0xff] %v620_v24 }
 0x524 PF: > { %s622_s17 = sadd.s32 3, %s2429_s3  ;;  %v1304_v25 = vld [vmem:[%s2417_s6 + $0x18] sm:$0xff] }
 0x525   : > { %p1305_p12 = scmp.ne.s32.totalorder %s622_s17, 0 }
 0x526   : > { %v630_v26 = vlaneseq (!%p1305_p12) }
 0x527   : > { %628 = sbr.rel (%p1305_p12) target bundleno = 1329 (0x531), region = 76 }
 0x528   : > { %v631_v27 = vshrl.u32 (!%p1305_p12), %v630_v26, 7 }
 0x52a   : > { %v632_v28 = vsub.s32 (!%p1305_p12), 0, %v631_v27 }
 0x52c   : > { %v633_v29 = vrot.slane (!%p1305_p12), %v2440_v0, %v632_v28 }
 0x52e   : > { %v635_v30 = vadd.f32 %v1304_v25, %v633_v29 }
 0x530   : > { %636 = vst [vmem:[#allocation2] sm:$0xff] %v635_v30 }
 0x531 PF: > { %p637_p8 = scmp.gt.s32.totalorder %s622_s17, 0  ;;  %p638_p7 = scmp.lt.s32.totalorder %s622_s17, 12 }
 0x533   : > { %p639_p9 = pnand %p638_p7, %p637_p8 }
 0x534   : > { %v1808_v32 = vpack.c.bf16 (!%p639_p9), %v2444_v2, %v2442_v1  ;;  %v2216_v33 = vmov (!%p639_p9), 0.0|0.0   ;;  %v1811_v34 = vpack.c.bf16 (!%p639_p9), %v2448_v4, %v2446_v3  ;;  %v1814_v35 = vpack.c.bf16 (!%p639_p9), %v2452_v6, %v2450_v5 }
 0x535   : > { %642 = sbr.rel (%p639_p9) target bundleno = 1723 (0x6bb), region = 80  ;;  %1807 = vmatprep.subr.bf16.mxu0 (!%p639_p9), %v2216_v33  ;;  %v1817_v36 = vpack.c.bf16 (!%p639_p9), %v2456_v8, %v2454_v7  ;;  %v1820_v37 = vpack.c.bf16 (!%p639_p9), %v2460_v10, %v2458_v9  ;;  %v1823_v38 = vpack.c.bf16 (!%p639_p9), %v2464_v12, %v2462_v11  ;;  %vm2217_vm3 = vmmov (!%p639_p9), 0  }
 0x536   : > { %1809 = vmatpush3.bf16.msra.mxu0 (!%p639_p9), %v1808_v32  ;;  %v2218_v39 = vmov (!%p639_p9), 0.0   ;;  %v1826_v40 = vpack.c.bf16 (!%p639_p9), %v2468_v14, %v2466_v13  ;;  %v1829_v41 = vpack.c.bf16 (!%p639_p9), %v2472_v16, %v2470_v15  ;;  %v721_v46 = vlaneseq (!%p639_p9) }
 0x537   : > { %v643_v31 = vld [vmem:[#allocation2] sm:$0xff] (!%p639_p9)  ;;  %1810 = vmatprep.subr.bf16.mxu0 (!%p639_p9), %v2216_v33  ;;  %1592 = vmatprep.mubr.msk.f32.mxu0 (!%p639_p9), %vm2217_vm3, %v2218_v39 }
 0x538   : > { %644 = vmax.xlane.f32.xlu0 (!%p639_p9), %v643_v31  ;;  %v722_v50 = vshrl.u32 (!%p639_p9), %v721_v46, 7 }
 0x53a   : > { %1812 = vmatpush3.bf16.msra.mxu0 (!%p639_p9), %v1811_v34  ;;  %v723_v51 = vsub.s32 (!%p639_p9), 0, %v722_v50 }
 0x53b   : > { %1813 = vmatprep.subr.bf16.mxu0 (!%p639_p9), %v2216_v33 }
 0x53c   : > { %v724_v53 = vrot.slane %v2477_v17, %v723_v51 }
 0x53e   : > { %1815 = vmatpush3.bf16.msra.mxu0 %v1814_v35 }
 0x53f   : > { %1816 = vmatprep.subr.bf16.mxu0 %v2216_v33 }
 0x542   : > { %1818 = vmatpush3.bf16.msra.mxu0 %v1817_v36 }
 0x543   : > { %1819 = vmatprep.subr.bf16.mxu0 %v2216_v33 }
 0x546   : > { %1821 = vmatpush3.bf16.msra.mxu0 %v1820_v37 }
 0x547   : > { %1822 = vmatprep.subr.bf16.mxu0 %v2216_v33 }
 0x54a   : > { %1824 = vmatpush3.bf16.msra.mxu0 %v1823_v38 }
 0x54b   : > { %1825 = vmatprep.subr.bf16.mxu0 %v2216_v33 }
 0x54e   : > { %1827 = vmatpush3.bf16.msra.mxu0 %v1826_v40 }
 0x54f   : > { %1828 = vmatprep.subr.bf16.mxu0 %v2216_v33 }
 0x552   : > { %1830 = vmatpush3.bf16.msra.mxu0 %v1829_v41 }
 0x5c5   : > { %v645_v42 = vpop.xlane.xlu0 %644 }
 0x5c6   : > { %v646_v43 = vsub.f32 %v643_v31, %v645_v42  ;;  %v719_v52 = vadd.f32 %v1304_v25, %v645_v42 }
 0x5c8   : > { %v647_v44 = vmul.f32 1.442695, %v646_v43  ;;  %v726_v55 = vadd.f32 %v724_v53, %v719_v52 }
 0x5ca   : > { %2048 = vpow2.f32 %v647_v44 }
 0x5d4   : > { %v2049_v45 = vpop.eup %2048 }
 0x5d5   : > { %1593 = vmatmul.mubr.f32.vlgmr.msra.gmra.mrb[0].mxu0 %v2049_v45 }
 0x6a8   : > { %v715_v47 = vpop.f32.mrb[0].mxu0 }
 0x6a9   : > { %v727_v48 = vmax.f32 %v715_v47, 1e-30  ;;  %v1594_v49 = vpop.f32.mrb[1].mxu0 }
 0x6ab   : > { %2050 = vlog2.f32 %v727_v48 }
 0x6b5   : > { %v2051_v54 = vpop.eup %2050 }
 0x6b6   : > { %v729_v56 = vmul.f32 0.6931472, %v2051_v54 }
 0x6b8   : > { %v730_v57 = vadd.f32 %v729_v56, %v726_v55 }
 0x6ba   : > { %731 = vst [vmem:[#allocation2] sm:$0xff] %v730_v57 }
 0x6bb PF: > { %s732_s7 = sadd.s32 4, %s2429_s3  ;;  %v1306_v58 = vld [vmem:[%s2417_s6 + $0x20] sm:$0xff] }
 0x6bc   : > { %p1307_p10 = scmp.ne.s32.totalorder %s732_s7, 0 }
 0x6bd   : > { %v740_v59 = vlaneseq (!%p1307_p10) }
 0x6be   : > { %738 = sbr.rel (%p1307_p10) target bundleno = 1736 (0x6c8), region = 84 }
 0x6bf   : > { %v741_v60 = vshrl.u32 (!%p1307_p10), %v740_v59, 7 }
 0x6c1   : > { %v742_v61 = vsub.s32 (!%p1307_p10), 0, %v741_v60 }
 0x6c3   : > { %v743_v62 = vrot.slane (!%p1307_p10), %v2440_v0, %v742_v61 }
 0x6c5   : > { %v745_v63 = vadd.f32 %v1306_v58, %v743_v62 }
 0x6c7   : > { %746 = vst [vmem:[#allocation2] sm:$0xff] %v745_v63 }
 0x6c8 PF: > { %p747_p3 = scmp.gt.s32.totalorder %s732_s7, 0  ;;  %p748_p6 = scmp.lt.s32.totalorder %s732_s7, 12 }
 0x6ca   : > { %p749_p11 = pnand %p748_p6, %p747_p3 }
 0x6cb   : > { %v1832_v19 = vpack.c.bf16 (!%p749_p11), %v2444_v2, %v2442_v1  ;;  %v2219_v20 = vmov (!%p749_p11), 0.0|0.0   ;;  %v1835_v21 = vpack.c.bf16 (!%p749_p11), %v2448_v4, %v2446_v3  ;;  %v1838_v22 = vpack.c.bf16 (!%p749_p11), %v2452_v6, %v2450_v5 }
 0x6cc   : > { %752 = sbr.rel (%p749_p11) target bundleno = 2130 (0x852), region = 88  ;;  %1831 = vmatprep.subr.bf16.mxu0 (!%p749_p11), %v2219_v20  ;;  %v1841_v23 = vpack.c.bf16 (!%p749_p11), %v2456_v8, %v2454_v7  ;;  %v1844_v24 = vpack.c.bf16 (!%p749_p11), %v2460_v10, %v2458_v9  ;;  %v1847_v25 = vpack.c.bf16 (!%p749_p11), %v2464_v12, %v2462_v11  ;;  %vm2220_vm4 = vmmov (!%p749_p11), 0  }
 0x6cd   : > { %1833 = vmatpush3.bf16.msra.mxu0 (!%p749_p11), %v1832_v19  ;;  %v2221_v26 = vmov (!%p749_p11), 0.0   ;;  %v1850_v27 = vpack.c.bf16 (!%p749_p11), %v2468_v14, %v2466_v13  ;;  %v1853_v28 = vpack.c.bf16 (!%p749_p11), %v2472_v16, %v2470_v15  ;;  %v831_v33 = vlaneseq (!%p749_p11) }
 0x6ce   : > { %v753_v18 = vld [vmem:[#allocation2] sm:$0xff] (!%p749_p11)  ;;  %1834 = vmatprep.subr.bf16.mxu0 (!%p749_p11), %v2219_v20  ;;  %1627 = vmatprep.mubr.msk.f32.mxu0 (!%p749_p11), %vm2220_vm4, %v2221_v26 }
 0x6cf   : > { %754 = vmax.xlane.f32.xlu0 (!%p749_p11), %v753_v18  ;;  %v832_v37 = vshrl.u32 (!%p749_p11), %v831_v33, 7 }
 0x6d1   : > { %1836 = vmatpush3.bf16.msra.mxu0 (!%p749_p11), %v1835_v21  ;;  %v833_v38 = vsub.s32 (!%p749_p11), 0, %v832_v37 }
 0x6d2   : > { %1837 = vmatprep.subr.bf16.mxu0 (!%p749_p11), %v2219_v20 }
 0x6d3   : > { %v834_v40 = vrot.slane %v2477_v17, %v833_v38 }
 0x6d5   : > { %1839 = vmatpush3.bf16.msra.mxu0 %v1838_v22 }
 0x6d6   : > { %1840 = vmatprep.subr.bf16.mxu0 %v2219_v20 }
 0x6d9   : > { %1842 = vmatpush3.bf16.msra.mxu0 %v1841_v23 }
 0x6da   : > { %1843 = vmatprep.subr.bf16.mxu0 %v2219_v20 }
 0x6dd   : > { %1845 = vmatpush3.bf16.msra.mxu0 %v1844_v24 }
 0x6de   : > { %1846 = vmatprep.subr.bf16.mxu0 %v2219_v20 }
 0x6e1   : > { %1848 = vmatpush3.bf16.msra.mxu0 %v1847_v25 }
 0x6e2   : > { %1849 = vmatprep.subr.bf16.mxu0 %v2219_v20 }
 0x6e5   : > { %1851 = vmatpush3.bf16.msra.mxu0 %v1850_v27 }
 0x6e6   : > { %1852 = vmatprep.subr.bf16.mxu0 %v2219_v20 }
 0x6e9   : > { %1854 = vmatpush3.bf16.msra.mxu0 %v1853_v28 }
 0x75c   : > { %v755_v29 = vpop.xlane.xlu0 %754 }
 0x75d   : > { %v756_v30 = vsub.f32 %v753_v18, %v755_v29  ;;  %v829_v39 = vadd.f32 %v1306_v58, %v755_v29 }
 0x75f   : > { %v757_v31 = vmul.f32 1.442695, %v756_v30  ;;  %v836_v42 = vadd.f32 %v834_v40, %v829_v39 }
 0x761   : > { %2052 = vpow2.f32 %v757_v31 }
 0x76b   : > { %v2053_v32 = vpop.eup %2052 }
 0x76c   : > { %1628 = vmatmul.mubr.f32.vlgmr.msra.gmra.mrb[0].mxu0 %v2053_v32 }
 0x83f   : > { %v825_v34 = vpop.f32.mrb[0].mxu0 }
 0x840   : > { %v837_v35 = vmax.f32 %v825_v34, 1e-30  ;;  %v1629_v36 = vpop.f32.mrb[1].mxu0 }
 0x842   : > { %2054 = vlog2.f32 %v837_v35 }
 0x84c   : > { %v2055_v41 = vpop.eup %2054 }
 0x84d   : > { %v839_v43 = vmul.f32 0.6931472, %v2055_v41 }
 0x84f   : > { %v840_v44 = vadd.f32 %v839_v43, %v836_v42 }
 0x851   : > { %841 = vst [vmem:[#allocation2] sm:$0xff] %v840_v44 }
 0x852 PF: > { %s842_s13 = sadd.s32 5, %s2429_s3  ;;  %v1308_v45 = vld [vmem:[%s2417_s6 + $0x28] sm:$0xff] }
 0x853   : > { %p1309_p0 = scmp.ne.s32.totalorder %s842_s13, 0 }
 0x854   : > { %v850_v46 = vlaneseq (!%p1309_p0) }
 0x855   : > { %848 = sbr.rel (%p1309_p0) target bundleno = 2143 (0x85f), region = 92 }
 0x856   : > { %v851_v47 = vshrl.u32 (!%p1309_p0), %v850_v46, 7 }
 0x858   : > { %v852_v48 = vsub.s32 (!%p1309_p0), 0, %v851_v47 }
 0x85a   : > { %v853_v49 = vrot.slane (!%p1309_p0), %v2440_v0, %v852_v48 }
 0x85c   : > { %v855_v50 = vadd.f32 %v1308_v45, %v853_v49 }
 0x85e   : > { %856 = vst [vmem:[#allocation2] sm:$0xff] %v855_v50 }
 0x85f PF: > { %p857_p2 = scmp.gt.s32.totalorder %s842_s13, 0  ;;  %p858_p5 = scmp.lt.s32.totalorder %s842_s13, 12 }
 0x861   : > { %p859_p4 = pnand %p858_p5, %p857_p2 }
 0x862   : > { %v1856_v52 = vpack.c.bf16 (!%p859_p4), %v2444_v2, %v2442_v1  ;;  %v2222_v53 = vmov (!%p859_p4), 0.0|0.0   ;;  %v1859_v54 = vpack.c.bf16 (!%p859_p4), %v2448_v4, %v2446_v3  ;;  %v1862_v55 = vpack.c.bf16 (!%p859_p4), %v2452_v6, %v2450_v5 }
 0x863   : > { %862 = sbr.rel (%p859_p4) target bundleno = 2537 (0x9e9), region = 96  ;;  %1855 = vmatprep.subr.bf16.mxu0 (!%p859_p4), %v2222_v53  ;;  %v1865_v56 = vpack.c.bf16 (!%p859_p4), %v2456_v8, %v2454_v7  ;;  %v1868_v57 = vpack.c.bf16 (!%p859_p4), %v2460_v10, %v2458_v9  ;;  %v1871_v58 = vpack.c.bf16 (!%p859_p4), %v2464_v12, %v2462_v11  ;;  %vm2223_vm5 = vmmov (!%p859_p4), 0  }
 0x864   : > { %1857 = vmatpush3.bf16.msra.mxu0 (!%p859_p4), %v1856_v52  ;;  %v2224_v59 = vmov (!%p859_p4), 0.0   ;;  %v1874_v60 = vpack.c.bf16 (!%p859_p4), %v2468_v14, %v2466_v13  ;;  %v1877_v61 = vpack.c.bf16 (!%p859_p4), %v2472_v16, %v2470_v15  ;;  %v941_v20 = vlaneseq (!%p859_p4) }
 0x865   : > { %v863_v51 = vld [vmem:[#allocation2] sm:$0xff] (!%p859_p4)  ;;  %1858 = vmatprep.subr.bf16.mxu0 (!%p859_p4), %v2222_v53  ;;  %1662 = vmatprep.mubr.msk.f32.mxu0 (!%p859_p4), %vm2223_vm5, %v2224_v59 }
 0x866   : > { %864 = vmax.xlane.f32.xlu0 (!%p859_p4), %v863_v51  ;;  %v942_v24 = vshrl.u32 (!%p859_p4), %v941_v20, 7 }
 0x868   : > { %1860 = vmatpush3.bf16.msra.mxu0 (!%p859_p4), %v1859_v54  ;;  %v943_v25 = vsub.s32 (!%p859_p4), 0, %v942_v24 }
 0x869   : > { %1861 = vmatprep.subr.bf16.mxu0 (!%p859_p4), %v2222_v53 }
 0x86a   : > { %v944_v27 = vrot.slane %v2477_v17, %v943_v25 }
 0x86c   : > { %1863 = vmatpush3.bf16.msra.mxu0 %v1862_v55 }
 0x86d   : > { %1864 = vmatprep.subr.bf16.mxu0 %v2222_v53 }
 0x870   : > { %1866 = vmatpush3.bf16.msra.mxu0 %v1865_v56 }
 0x871   : > { %1867 = vmatprep.subr.bf16.mxu0 %v2222_v53 }
 0x874   : > { %1869 = vmatpush3.bf16.msra.mxu0 %v1868_v57 }
 0x875   : > { %1870 = vmatprep.subr.bf16.mxu0 %v2222_v53 }
 0x878   : > { %1872 = vmatpush3.bf16.msra.mxu0 %v1871_v58 }
 0x879   : > { %1873 = vmatprep.subr.bf16.mxu0 %v2222_v53 }
 0x87c   : > { %1875 = vmatpush3.bf16.msra.mxu0 %v1874_v60 }
 0x87d   : > { %1876 = vmatprep.subr.bf16.mxu0 %v2222_v53 }
 0x880   : > { %1878 = vmatpush3.bf16.msra.mxu0 %v1877_v61 }
 0x8f3   : > { %v865_v62 = vpop.xlane.xlu0 %864 }
 0x8f4   : > { %v866_v63 = vsub.f32 %v863_v51, %v865_v62  ;;  %v939_v26 = vadd.f32 %v1308_v45, %v865_v62 }
 0x8f6   : > { %v867_v18 = vmul.f32 1.442695, %v866_v63  ;;  %v946_v29 = vadd.f32 %v944_v27, %v939_v26 }
 0x8f8   : > { %2056 = vpow2.f32 %v867_v18 }
 0x902   : > { %v2057_v19 = vpop.eup %2056 }
 0x903   : > { %1663 = vmatmul.mubr.f32.vlgmr.msra.gmra.mrb[0].mxu0 %v2057_v19 }
 0x9d6   : > { %v935_v21 = vpop.f32.mrb[0].mxu0 }
 0x9d7   : > { %v947_v22 = vmax.f32 %v935_v21, 1e-30  ;;  %v1664_v23 = vpop.f32.mrb[1].mxu0 }
 0x9d9   : > { %2058 = vlog2.f32 %v947_v22 }
 0x9e3   : > { %v2059_v28 = vpop.eup %2058 }
 0x9e4   : > { %v949_v30 = vmul.f32 0.6931472, %v2059_v28 }
 0x9e6   : > { %v950_v31 = vadd.f32 %v949_v30, %v946_v29 }
 0x9e8   : > { %951 = vst [vmem:[#allocation2] sm:$0xff] %v950_v31 }
 0x9e9 PF: > { %s952_s9 = sadd.s32 6, %s2429_s3  ;;  %v1310_v32 = vld [vmem:[%s2417_s6 + $0x30] sm:$0xff] }
 0x9ea   : > { %p1311_p13 = scmp.ne.s32.totalorder %s952_s9, 0 }
 0x9eb   : > { %v960_v33 = vlaneseq (!%p1311_p13) }
 0x9ec   : > { %958 = sbr.rel (%p1311_p13) target bundleno = 2550 (0x9f6), region = 100 }
 0x9ed   : > { %v961_v34 = vshrl.u32 (!%p1311_p13), %v960_v33, 7 }
 0x9ef   : > { %v962_v35 = vsub.s32 (!%p1311_p13), 0, %v961_v34 }
 0x9f1   : > { %v963_v36 = vrot.slane (!%p1311_p13), %v2440_v0, %v962_v35 }
 0x9f3   : > { %v965_v37 = vadd.f32 %v1310_v32, %v963_v36 }
 0x9f5   : > { %966 = vst [vmem:[#allocation2] sm:$0xff] %v965_v37 }
 0x9f6 PF: > { %p967_p1 = scmp.gt.s32.totalorder %s952_s9, 0  ;;  %p968_p12 = scmp.lt.s32.totalorder %s952_s9, 12 }
 0x9f8   : > { %p969_p8 = pnand %p968_p12, %p967_p1 }
 0x9f9   : > { %v1880_v39 = vpack.c.bf16 (!%p969_p8), %v2444_v2, %v2442_v1  ;;  %v2225_v40 = vmov (!%p969_p8), 0.0|0.0   ;;  %v1883_v41 = vpack.c.bf16 (!%p969_p8), %v2448_v4, %v2446_v3  ;;  %v1886_v42 = vpack.c.bf16 (!%p969_p8), %v2452_v6, %v2450_v5 }
 0x9fa   : > { %972 = sbr.rel (%p969_p8) target bundleno = 2944 (0xb80), region = 104  ;;  %1879 = vmatprep.subr.bf16.mxu0 (!%p969_p8), %v2225_v40  ;;  %v1889_v43 = vpack.c.bf16 (!%p969_p8), %v2456_v8, %v2454_v7  ;;  %v1892_v44 = vpack.c.bf16 (!%p969_p8), %v2460_v10, %v2458_v9  ;;  %v1895_v45 = vpack.c.bf16 (!%p969_p8), %v2464_v12, %v2462_v11  ;;  %vm2226_vm6 = vmmov (!%p969_p8), 0  }
 0x9fb   : > { %1881 = vmatpush3.bf16.msra.mxu0 (!%p969_p8), %v1880_v39  ;;  %v2227_v46 = vmov (!%p969_p8), 0.0   ;;  %v1898_v47 = vpack.c.bf16 (!%p969_p8), %v2468_v14, %v2466_v13  ;;  %v1901_v48 = vpack.c.bf16 (!%p969_p8), %v2472_v16, %v2470_v15  ;;  %v1051_v53 = vlaneseq (!%p969_p8) }
 0x9fc   : > { %v973_v38 = vld [vmem:[#allocation2] sm:$0xff] (!%p969_p8)  ;;  %1882 = vmatprep.subr.bf16.mxu0 (!%p969_p8), %v2225_v40  ;;  %1697 = vmatprep.mubr.msk.f32.mxu0 (!%p969_p8), %vm2226_vm6, %v2227_v46 }
 0x9fd   : > { %974 = vmax.xlane.f32.xlu0 (!%p969_p8), %v973_v38  ;;  %v1052_v57 = vshrl.u32 (!%p969_p8), %v1051_v53, 7 }
 0x9ff   : > { %1884 = vmatpush3.bf16.msra.mxu0 (!%p969_p8), %v1883_v41  ;;  %v1053_v58 = vsub.s32 (!%p969_p8), 0, %v1052_v57 }
 0xa00   : > { %1885 = vmatprep.subr.bf16.mxu0 (!%p969_p8), %v2225_v40 }
 0xa01   : > { %v1054_v60 = vrot.slane %v2477_v17, %v1053_v58 }
 0xa03   : > { %1887 = vmatpush3.bf16.msra.mxu0 %v1886_v42 }
 0xa04   : > { %1888 = vmatprep.subr.bf16.mxu0 %v2225_v40 }
 0xa07   : > { %1890 = vmatpush3.bf16.msra.mxu0 %v1889_v43 }
 0xa08   : > { %1891 = vmatprep.subr.bf16.mxu0 %v2225_v40 }
 0xa0b   : > { %1893 = vmatpush3.bf16.msra.mxu0 %v1892_v44 }
 0xa0c   : > { %1894 = vmatprep.subr.bf16.mxu0 %v2225_v40 }
 0xa0f   : > { %1896 = vmatpush3.bf16.msra.mxu0 %v1895_v45 }
 0xa10   : > { %1897 = vmatprep.subr.bf16.mxu0 %v2225_v40 }
 0xa13   : > { %1899 = vmatpush3.bf16.msra.mxu0 %v1898_v47 }
 0xa14   : > { %1900 = vmatprep.subr.bf16.mxu0 %v2225_v40 }
 0xa17   : > { %1902 = vmatpush3.bf16.msra.mxu0 %v1901_v48 }
 0xa8a   : > { %v975_v49 = vpop.xlane.xlu0 %974 }
 0xa8b   : > { %v976_v50 = vsub.f32 %v973_v38, %v975_v49  ;;  %v1049_v59 = vadd.f32 %v1310_v32, %v975_v49 }
 0xa8d   : > { %v977_v51 = vmul.f32 1.442695, %v976_v50  ;;  %v1056_v62 = vadd.f32 %v1054_v60, %v1049_v59 }
 0xa8f   : > { %2060 = vpow2.f32 %v977_v51 }
 0xa99   : > { %v2061_v52 = vpop.eup %2060 }
 0xa9a   : > { %1698 = vmatmul.mubr.f32.vlgmr.msra.gmra.mrb[0].mxu0 %v2061_v52 }
 0xb6d   : > { %v1045_v54 = vpop.f32.mrb[0].mxu0 }
 0xb6e   : > { %v1057_v55 = vmax.f32 %v1045_v54, 1e-30  ;;  %v1699_v56 = vpop.f32.mrb[1].mxu0 }
 0xb70   : > { %2062 = vlog2.f32 %v1057_v55 }
 0xb7a   : > { %v2063_v61 = vpop.eup %2062 }
 0xb7b   : > { %v1059_v63 = vmul.f32 0.6931472, %v2063_v61 }
 0xb7d   : > { %v1060_v18 = vadd.f32 %v1059_v63, %v1056_v62 }
 0xb7f   : > { %1061 = vst [vmem:[#allocation2] sm:$0xff] %v1060_v18 }
 0xb80 PF: > { %s1062_s15 = sadd.s32 7, %s2429_s3  ;;  %v1312_v19 = vld [vmem:[%s2417_s6 + $0x38] sm:$0xff] }
 0xb81   : > { %p1313_p7 = scmp.ne.s32.totalorder %s1062_s15, 0 }
 0xb82   : > { %v1070_v20 = vlaneseq (!%p1313_p7) }
 0xb83   : > { %1068 = sbr.rel (%p1313_p7) target bundleno = 2957 (0xb8d), region = 108 }
 0xb84   : > { %v1071_v21 = vshrl.u32 (!%p1313_p7), %v1070_v20, 7 }
 0xb86   : > { %v1072_v22 = vsub.s32 (!%p1313_p7), 0, %v1071_v21 }
 0xb88   : > { %v1073_v23 = vrot.slane (!%p1313_p7), %v2440_v0, %v1072_v22 }
 0xb8a   : > { %v1075_v24 = vadd.f32 %v1312_v19, %v1073_v23 }
 0xb8c   : > { %1076 = vst [vmem:[#allocation2] sm:$0xff] %v1075_v24 }
 0xb8d PF: > { %p1077_p9 = scmp.gt.s32.totalorder %s1062_s15, 0  ;;  %p1078_p10 = scmp.lt.s32.totalorder %s1062_s15, 12 }
 0xb8f   : > { %p1079_p3 = pnand %p1078_p10, %p1077_p9 }
 0xb90   : > { %v1904_v26 = vpack.c.bf16 (!%p1079_p3), %v2444_v2, %v2442_v1  ;;  %v2228_v27 = vmov (!%p1079_p3), 0.0|0.0   ;;  %v1907_v28 = vpack.c.bf16 (!%p1079_p3), %v2448_v4, %v2446_v3  ;;  %v1910_v0 = vpack.c.bf16 (!%p1079_p3), %v2452_v6, %v2450_v5 }
 0xb91   : > { %1082 = sbr.rel (%p1079_p3) target bundleno = 3351 (0xd17), region = 112  ;;  %1903 = vmatprep.subr.bf16.mxu0 (!%p1079_p3), %v2228_v27  ;;  %v1913_v29 = vpack.c.bf16 (!%p1079_p3), %v2456_v8, %v2454_v7  ;;  %v1916_v1 = vpack.c.bf16 (!%p1079_p3), %v2460_v10, %v2458_v9  ;;  %v1919_v2 = vpack.c.bf16 (!%p1079_p3), %v2464_v12, %v2462_v11  ;;  %vm2229_vm7 = vmmov (!%p1079_p3), 0  }
 0xb92   : > { %1905 = vmatpush3.bf16.msra.mxu0 (!%p1079_p3), %v1904_v26  ;;  %v2230_v3 = vmov (!%p1079_p3), 0.0   ;;  %v1922_v4 = vpack.c.bf16 (!%p1079_p3), %v2468_v14, %v2466_v13  ;;  %v1925_v5 = vpack.c.bf16 (!%p1079_p3), %v2472_v16, %v2470_v15  ;;  %v1161_v10 = vlaneseq (!%p1079_p3) }
 0xb93   : > { %v1083_v25 = vld [vmem:[#allocation2] sm:$0xff] (!%p1079_p3)  ;;  %1906 = vmatprep.subr.bf16.mxu0 (!%p1079_p3), %v2228_v27  ;;  %1732 = vmatprep.mubr.msk.f32.mxu0 (!%p1079_p3), %vm2229_vm7, %v2230_v3 }
 0xb94   : > { %1084 = vmax.xlane.f32.xlu0 (!%p1079_p3), %v1083_v25  ;;  %v1162_v31 = vshrl.u32 (!%p1079_p3), %v1161_v10, 7 }
 0xb96   : > { %1908 = vmatpush3.bf16.msra.mxu0 (!%p1079_p3), %v1907_v28  ;;  %v1163_v13 = vsub.s32 (!%p1079_p3), 0, %v1162_v31 }
 0xb97   : > { %1909 = vmatprep.subr.bf16.mxu0 (!%p1079_p3), %v2228_v27 }
 0xb98   : > { %v1164_v32 = vrot.slane %v2477_v17, %v1163_v13 }
 0xb9a   : > { %1911 = vmatpush3.bf16.msra.mxu0 %v1910_v0 }
 0xb9b   : > { %1912 = vmatprep.subr.bf16.mxu0 %v2228_v27 }
 0xb9e   : > { %1914 = vmatpush3.bf16.msra.mxu0 %v1913_v29 }
 0xb9f   : > { %1915 = vmatprep.subr.bf16.mxu0 %v2228_v27 }
 0xba2   : > { %1917 = vmatpush3.bf16.msra.mxu0 %v1916_v1 }
 0xba3   : > { %1918 = vmatprep.subr.bf16.mxu0 %v2228_v27 }
 0xba6   : > { %1920 = vmatpush3.bf16.msra.mxu0 %v1919_v2 }
 0xba7   : > { %1921 = vmatprep.subr.bf16.mxu0 %v2228_v27 }
 0xbaa   : > { %1923 = vmatpush3.bf16.msra.mxu0 %v1922_v4 }
 0xbab   : > { %1924 = vmatprep.subr.bf16.mxu0 %v2228_v27 }
 0xbae   : > { %1926 = vmatpush3.bf16.msra.mxu0 %v1925_v5 }
 0xc21   : > { %v1085_v6 = vpop.xlane.xlu0 %1084 }
 0xc22   : > { %v1086_v7 = vsub.f32 %v1083_v25, %v1085_v6  ;;  %v1159_v14 = vadd.f32 %v1312_v19, %v1085_v6 }
 0xc24   : > { %v1087_v8 = vmul.f32 1.442695, %v1086_v7  ;;  %v1166_v15 = vadd.f32 %v1164_v32, %v1159_v14 }
 0xc26   : > { %2064 = vpow2.f32 %v1087_v8 }
 0xc30   : > { %v2065_v9 = vpop.eup %2064 }
 0xc31   : > { %1733 = vmatmul.mubr.f32.vlgmr.msra.gmra.mrb[0].mxu0 %v2065_v9 }
 0xd04   : > { %v1155_v11 = vpop.f32.mrb[0].mxu0 }
 0xd05   : > { %v1167_v12 = vmax.f32 %v1155_v11, 1e-30  ;;  %v1734_v30 = vpop.f32.mrb[1].mxu0 }
 0xd07   : > { %2066 = vlog2.f32 %v1167_v12 }
 0xd11   : > { %v2067_v33 = vpop.eup %2066 }
 0xd12   : > { %v1169_v16 = vmul.f32 0.6931472, %v2067_v33 }
 0xd14   : > { %v1170_v34 = vadd.f32 %v1169_v16, %v1166_v15 }
 0xd16   : > { %1171 = vst [vmem:[#allocation2] sm:$0xff] %v1170_v34 }
 0xd17 PF: > { %p1314_p6 = scmp.ne.s32.totalorder %s2184_s21, 1 }
 0xd18   : > { %v1315_v36 = vld [vmem:[%s2672_s2] ss:$0 sm:$0xff] (!%p1314_p6)  ;;  %vm1195_vm8 = vcmask (!%p1314_p6), 7168  }
 0xd19   : > { %1175 = sbr.rel (%p1314_p6) target bundleno = 3675 (0xe5b), region = 116 }
 0xd1d   : > { %v1176_v35 = vld [vmem:[#allocation2] sm:$0xff] (!%p1314_p6) }
 0xd1e   : > { %v1184_v37 = vadd.f32 (!%p1314_p6), %v1315_v36, %v1176_v35 }
 0xd20   : > { %1185 = vmax.xlane.f32.xlu0 %v1184_v37 }
 0xdad   : > { %v1186_v38 = vpop.xlane.xlu0 %1185 }
 0xdae   : > { %v1187_v39 = vsub.f32 %v1184_v37, %v1186_v38 }
 0xdb0   : > { %v1188_v17 = vmul.f32 1.442695, %v1187_v39 }
 0xdb2   : > { %2068 = vpow2.f32 %v1188_v17 }
 0xdbc   : > { %v2069_v40 = vpop.eup %2068 }
 0xdbd   : > { %1190 = vadd.xlane.f32.xlu0 %v2069_v40 }
 0xe4a   : > { %v1191_v41 = vpop.xlane.xlu0 %1190 }
 0xe4b   : > { %2070 = vlog2.f32 %v1191_v41 }
 0xe55   : > { %v2071_v42 = vpop.eup %2070 }
 0xe56   : > { %v1193_v43 = vmul.f32 0.6931472, %v2071_v42 }
 0xe58   : > { %v1194_v44 = vadd.f32 %v1193_v43, %v1186_v38 }
 0xe5a   : > { %1196 = vst.msk [vmem:[%s2435_s14] sm:$0xff] %vm1195_vm8, %v1194_v44 }
 0xe5b PF: > { %s19_s25 = sadd.s32 1, %s2200_s25   ;;  %s2697_s18 = smov %s2176_s19 }
 0xe5c   : > { %p16_p11 = scmp.ge.s32.totalorder %s19_s25, 6   ;;  %s2698_s19 = smov %s2180_s20 }
 0xe5d   : > { %s2699_s20 = smov %s2412_s10  ;;  %s2700_s21 = smov %s2192_s23 }
 0xe5e   : > { %s2701_s22 = smov %s2196_s24  ;;  %s2702_s23 = smov %s2705_s11 }
 0xe5f   : > { %s2703_s24 = smov %s2709_s12  ;;  %18 = sbr.rel (!%p16_p11) target bundleno = 8 (0x8), region = 159 }
 0xe66   :  { %1216 = vsyncpa [#allocation4], 1 }
 0xe67   :  { %1218 = vsyncpa [#allocation4 + $0x1], 1 }
 0xe68   :  { %1219 = vsyncpa [#allocation6], 1 }

</bundles_post_ra>
